<compile_context>
chip_gen: v7x
topology: tpu7x:2x2x1
jax: 0.10.0
libtpu: 0.0.40
codegen_flags: <defaults>
</compile_context>

<pallas_src>
import functools
import math

import jax
import jax.numpy as jnp
from jax.experimental import pallas as pl
from jax.experimental.pallas import tpu as pltpu

EPS = 1e-5  # PyTorch nn.LayerNorm default eps


def _round_up(x, m):
    return ((x + m - 1) // m) * m


def _layernorm(x, gamma, beta):
    # Single-pass LayerNorm: var = E[x^2] - mean^2 (one fewer full-size subtract than the
    # two-pass form; both cross-lane reduces stay on the XLU).
    mean = jnp.mean(x, axis=-1, keepdims=True)
    mean2 = jnp.mean(x * x, axis=-1, keepdims=True)
    var = mean2 - mean * mean
    return (x - mean) * jax.lax.rsqrt(var + EPS) * gamma + beta


def _gelu_tanh(x):
    # tanh-approximate GELU: tanh runs on the EUP (its own VLIW slot), relieving the VALU
    # compared with an erf polynomial.  Max abs error vs exact erf-GELU ~3e-4.
    c = 0.7978845608028654  # sqrt(2/pi)
    return 0.5 * x * (1.0 + jnp.tanh(c * (x + 0.044715 * (x * x * x))))


def classification_decoder_kernel(
    lat_ref,
    kv_g_ref, kv_b_ref, wkv_ref, bkv_ref,
    hq_ref, hvt_ref, wo_ref, bo_ref,
    qkv_g_ref, qkv_b_ref, w1_ref, b1_ref, w2_ref, b2_ref,
    out_ref,
    *, tb, m_pad, m_valid,
):
    # ---- KV LayerNorm + fused K|V projection for the whole batch block (MXU) ----
    lat = lat_ref[...].astype(jnp.float32)                                    # (TB*Mp, D)
    kv_ln = _layernorm(lat, kv_g_ref[...], kv_b_ref[...])
    kv = jnp.dot(kv_ln, wkv_ref[...],
                 preferred_element_type=jnp.float32) + bkv_ref[...]           # (TB*Mp, 2C)

    # ---- attention scores: query*scale already folded into hq_ref (2C, H) ----
    scores = jnp.dot(kv, hq_ref[...], preferred_element_type=jnp.float32)     # (TB*Mp, H)
    num_heads = scores.shape[-1]
    scores = scores.reshape(tb, m_pad, num_heads)        # tile-preserving: m_pad % 8 == 0
    if m_pad != m_valid:  # mask padded latent rows out of the softmax
        m_idx = jax.lax.broadcasted_iota(jnp.int32, (tb, m_pad, num_heads), 1)
        scores = jnp.where(m_idx < m_valid, scores, -1e30)

    # ---- softmax over latents, per (batch row, head) ----
    mx = jnp.max(scores, axis=1, keepdims=True)
    p = jnp.exp(scores - mx)
    denom = jnp.sum(p, axis=1, keepdims=True)
    p = p * pl.reciprocal(denom, approx=True)            # EUP, frees a VALU divide
    p = p.reshape(tb * m_pad, num_heads)

    # ---- attention-weighted values + output projection ----
    # hvt_ref is zero over the K half so p_v * kv selects only the V columns; wo_ref's
    # K-half rows are zero as well -> no lane-offset slicing / relayouts anywhere.
    p_v = jnp.dot(p, hvt_ref[...], preferred_element_type=jnp.float32)        # (TB*Mp, 2C)
    two_c = kv.shape[-1]
    weighted = jnp.sum((p_v * kv).reshape(tb, m_pad, two_c), axis=1)          # (TB, 2C)
    x = jnp.dot(weighted, wo_ref[...],
                preferred_element_type=jnp.float32) + bo_ref[...]             # (TB, C)

    # ---- pre-LN feed-forward with residual (use_query_residual=False upstream) ----
    x_ln = _layernorm(x, qkv_g_ref[...], qkv_b_ref[...])
    h1 = jnp.dot(x_ln, w1_ref[...], preferred_element_type=jnp.float32) + b1_ref[...]
    h1 = _gelu_tanh(h1)
    ffn = jnp.dot(h1, w2_ref[...], preferred_element_type=jnp.float32) + b2_ref[...]

    out_ref[...] = (x + ffn).astype(out_ref.dtype)                            # (TB, C)


def _choose_batch_block(B, m_pad, D, C, CW, H, lat_itemsize):
    """Pick TB (batch rows per grid step) against a VMEM budget safe for v7x (64 MiB)."""
    # Target: >= ~512 latent rows per step and an output block of >= 128 batch rows.
    tb = max(128, _round_up(-(-512 // m_pad), 8))
    # Live bytes per batch row: double-buffered bf16 latents block + fp32 intermediates
    # (kv_ln, kv, p_v, scores, p) + small per-row vectors.  Params counted separately.
    per_row = (2 * m_pad * D * lat_itemsize
               + 4 * m_pad * (D + 4 * C + 2 * H)
               + 4 * (6 * C + 2 * CW))
    budget = 24 * 1024 * 1024
    tb = min(tb, max(8, (budget // max(per_row, 1)) // 8 * 8))
    b8 = _round_up(B, 8)
    if b8 <= tb:
        if B >= 256:
            # Big single-block batch: split in two so both v7x TensorCores get work.
            tb = _round_up(-(-b8 // 2), 8)
        else:
            tb = B if B <= 8 else b8
    return tb


def classification_decoder(latents, params, *, num_heads, batch_block=None):
    """Pallas wrapper.  latents: (B, M, D) -> logits (B, C) float32.

    The module's `query` forward argument is ignored (it uses self.task_ids).
    """
    # TODO(synk): q_mask is not supported (only the q_mask=None path is implemented).
    B, M, D = latents.shape
    C = params["task_ids"].shape[-1]
    CW = params["w1T"].shape[-1]
    assert C % num_heads == 0, "num_classes must be divisible by num_heads"
    hd = C // num_heads
    scale = hd ** (-0.5)

    # ---- hoist the batch-invariant query path: LN(task_ids) @ Wq + bq, done once ----
    q_ln = _layernorm(params["task_ids"], params["q_g"], params["q_b"])       # (1, C)
    q = q_ln @ params["wqT"] + params["bq"]                                   # (1, C)

    # ---- fold query*scale into a zero-padded head-pooling matrix over [K|V] columns ----
    head_of_col = jnp.arange(C, dtype=jnp.int32) // hd
    hpool = (head_of_col[:, None] ==
             jnp.arange(num_heads, dtype=jnp.int32)[None, :]).astype(jnp.float32)  # (C, H)
    hq_ext = jnp.concatenate(
        [hpool * (q * scale).reshape(C, 1),
         jnp.zeros((C, num_heads), jnp.float32)], axis=0)                     # (2C, H)
    hvt_ext = jnp.concatenate(
        [jnp.zeros((num_heads, C), jnp.float32), hpool.T], axis=1)            # (H, 2C)

    # ---- fused K|V projection; output projection lifted to the 2C domain ----
    wkv = jnp.concatenate([params["wkT"], params["wvT"]], axis=1)             # (D, 2C)
    bkv = jnp.concatenate([params["bk"], params["bv"]], axis=1)               # (1, 2C)
    wo_ext = jnp.concatenate(
        [jnp.zeros((C, C), jnp.float32), params["woT"]], axis=0)              # (2C, C)

    # ---- pad M to a multiple of 8 (tile-preserving reshapes); pick the batch block ----
    m_pad = _round_up(M, 8)
    lat_itemsize = 2  # latents streamed as bf16
    if batch_block is None:
        TB = _choose_batch_block(B, m_pad, D, C, CW, num_heads, lat_itemsize)
    else:
        TB = min(batch_block, _round_up(B, 8)) if B > 8 else min(batch_block, B)
    n_blocks = -(-B // TB)
    if n_blocks > 1:
        assert TB % 8 == 0, "batch_block must be a multiple of 8 when it splits the batch"
    Bp = n_blocks * TB

    lat = latents.astype(jnp.bfloat16)    # halve dominant HBM traffic; compute stays f32
    if Bp != B or m_pad != M:
        lat = jnp.pad(lat, ((0, Bp - B), (0, m_pad - M), (0, 0)))
    lat2 = lat.reshape(Bp * m_pad, D)

    ordered = [
        params["kv_g"], params["kv_b"], wkv, bkv,
        hq_ext, hvt_ext, wo_ext, params["bo"],
        params["qkv_g"], params["qkv_b"],
        params["w1T"], params["b1"], params["w2T"], params["b2"],
    ]
    param_bytes = sum(int(a.size) * a.dtype.itemsize for a in ordered)

    kernel = functools.partial(classification_decoder_kernel,
                               tb=TB, m_pad=m_pad, m_valid=M)

    # ---- advisory cost estimate (params DMA'd once; latents/out streamed once) ----
    R = Bp * m_pad
    flops = int(2 * R * D * 2 * C                    # fused K|V projection
                + 2 * R * 2 * C * num_heads * 2      # score pooling + value expansion
                + 2 * R * 2 * C                      # p_v * kv + over-M reduce
                + 2 * Bp * 2 * C * C                 # attention output projection
                + 2 * Bp * C * CW * 2)               # FFN
    transcendentals = int(R * num_heads + Bp * (CW + num_heads) + R + Bp)
    bytes_accessed = int(lat2.size * lat_itemsize + param_bytes + Bp * C * 4)

    # ---- VMEM budget: single-buffered params + double-buffered streamed blocks
    #      + live fp32 intermediates, with 2x headroom (fits v7x's 64 MiB VMEM) ----
    live = (param_bytes
            + 2 * TB * m_pad * D * lat_itemsize
            + 2 * TB * C * 4
            + 4 * TB * m_pad * (D + 4 * C + 2 * num_heads)
            + 4 * TB * (6 * C + 2 * CW))
    vmem_limit = int(min(40 * 1024 * 1024, max(16 * 1024 * 1024, 2 * live)))

    out_shape = jax.ShapeDtypeStruct((Bp, C), jnp.float32)
    lat_spec = pl.BlockSpec((TB * m_pad, D), lambda b: (b, 0))
    out_spec = pl.BlockSpec((TB, C), lambda b: (b, 0))
    cparams = pltpu.CompilerParams(
        dimension_semantics=("parallel",),   # batch blocks are independent (v7x: 2 TCs)
        vmem_limit_bytes=vmem_limit)
    cost = pl.CostEstimate(flops=flops, transcendentals=transcendentals,
                           bytes_accessed=bytes_accessed)

    def _run(single_buffer_params):
        def param_spec(arr):
            nd = arr.ndim
            imap = lambda b, _nd=nd: (0,) * _nd
            if single_buffer_params:
                # Grid-invariant: DMA'd once; single buffering frees VMEM for a larger TB.
                return pl.BlockSpec(arr.shape, imap, pipeline_mode=pl.Buffered(1))
            return pl.BlockSpec(arr.shape, imap)

        return pl.pallas_call(
            kernel,
            out_shape=out_shape,
            grid=(n_blocks,),
            in_specs=[lat_spec] + [param_spec(a) for a in ordered],
            out_specs=out_spec,
            compiler_params=cparams,
            cost_estimate=cost,
        )(lat2, *ordered)

    try:
        out = _run(True)
    except Exception:  # pragma: no cover - fallback for Pallas w/o BlockSpec pipeline_mode
        out = _run(False)
    return out[:B]


def reference(latents, p, *, num_heads):
    """Pure-JAX mirror of the PyTorch forward (exact erf GELU, exact softmax, 2-pass LN)."""
    def ln(x, g, b):
        m = x.mean(-1, keepdims=True)
        v = ((x - m) ** 2).mean(-1, keepdims=True)
        return (x - m) / jnp.sqrt(v + EPS) * g + b

    B, M, D = latents.shape
    C = p["task_ids"].shape[-1]
    hd = C // num_heads

    q = jnp.broadcast_to(p["task_ids"][None, :, :], (B, 1, C))
    kv = ln(latents, p["kv_g"][0], p["kv_b"][0])
    qn = ln(q, p["q_g"][0], p["q_b"][0])

    K = kv @ p["wkT"] + p["bk"][0]
    V = kv @ p["wvT"] + p["bv"][0]
    Q = qn @ p["wqT"] + p["bq"][0]

    Kh = K.reshape(B, M, num_heads, hd).transpose(0, 2, 1, 3)
    Vh = V.reshape(B, M, num_heads, hd).transpose(0, 2, 1, 3)
    Qh = Q.reshape(B, 1, num_heads, hd).transpose(0, 2, 1, 3)

    att = (Qh @ jnp.swapaxes(Kh, -1, -2)) * (hd ** (-0.5))
    att = jax.nn.softmax(att, axis=-1)
    w = att @ Vh                                  # (B, H, 1, hd)
    w = w.transpose(0, 2, 1, 3).reshape(B, 1, C)

    x = w @ p["woT"] + p["bo"][0]                 # use_query_residual=False
    xl = ln(x, p["qkv_g"][0], p["qkv_b"][0])
    h = xl @ p["w1T"] + p["b1"][0]
    h = 0.5 * h * (1.0 + jax.lax.erf(h / math.sqrt(2.0)))
    x = x + (h @ p["w2T"] + p["b2"][0])
    return x[:, 0, :]


def make_params(key, *, num_classes, latent_dim, widening_factor):
    C, D, WF = num_classes, latent_dim, widening_factor
    ks = jax.random.split(key, 16)
    nrm = lambda k, shape, s=0.1: (s * jax.random.normal(k, shape)).astype(jnp.float32)
    return {
        "task_ids": jax.random.normal(ks[0], (1, C), jnp.float32),   # torch.randn(1, C)
        "kv_g": 1.0 + nrm(ks[1], (1, D)), "kv_b": nrm(ks[2], (1, D)),
        "q_g": 1.0 + nrm(ks[3], (1, C)), "q_b": nrm(ks[4], (1, C)),
        "qkv_g": 1.0 + nrm(ks[5], (1, C)), "qkv_b": nrm(ks[6], (1, C)),
        "wkT": nrm(ks[7], (D, C)), "bk": nrm(ks[8], (1, C)),
        "wqT": nrm(ks[9], (C, C)), "bq": nrm(ks[10], (1, C)),
        "wvT": nrm(ks[11], (D, C)), "bv": nrm(ks[12], (1, C)),
        "woT": nrm(ks[13], (C, C)), "bo": nrm(ks[14], (1, C)),
        "w1T": nrm(ks[15], (C, C * WF)),
        "b1": jnp.zeros((1, C * WF), jnp.float32),
        "w2T": nrm(jax.random.fold_in(key, 99), (C * WF, C)),
        "b2": jnp.zeros((1, C), jnp.float32),
    }


if __name__ == "__main__":
    # head_dim in ClassificationDecoder.__init__ is unused upstream: PerceiverDecoder
    # uses qk_out_dim/v_out_dim (both None -> num_classes).
    NUM_CLASSES, NUM_HEADS, WIDENING = 16, 2, 1
    D = 32

    key = jax.random.PRNGKey(0)
    k_lat, k_par = jax.random.split(key)
    params = make_params(k_par, num_classes=NUM_CLASSES, latent_dim=D,
                         widening_factor=WIDENING)

    def check(lat, batch_block=None, tol=2e-3):
        out = jax.block_until_ready(
            classification_decoder(lat, params, num_heads=NUM_HEADS,
                                   batch_block=batch_block))
        # The reference is fed the same bf16-rounded latents the kernel streams, so the
        # comparison isolates kernel correctness from the intentional bf16 input cast.
        lat_q = lat.astype(jnp.bfloat16).astype(jnp.float32)
        ref = reference(lat_q, params, num_heads=NUM_HEADS)
        assert out.shape == ref.shape, (out.shape, ref.shape)
        err = float(jnp.max(jnp.abs(out - ref)))
        assert jnp.allclose(out, ref, atol=tol, rtol=tol), f"max abs err = {err}"

    # config 1: single grid step, small batch, M already a multiple of 8
    B1, M1 = 2, 8
    check(jax.random.normal(k_lat, (B1, M1, D), jnp.float32))

    # config 2: multi-step grid + batch padding + latent (M) padding/softmax masking
    B2, M2 = 10, 5
    check(jax.random.normal(jax.random.fold_in(key, 7), (B2, M2, D), jnp.float32),
          batch_block=8)

    print("KERNEL_OK")
</pallas_src>

<mosaic_0001>
module attributes {stable_mosaic.version = 11 : i64} {
  func.func @classification_decoder_kernel(%arg0: i32, %arg1: memref<16x32xbf16, #tpu.memory_space<vmem>>, %arg2: memref<1x32xf32, #tpu.memory_space<vmem>>, %arg3: memref<1x32xf32, #tpu.memory_space<vmem>>, %arg4: memref<32x32xf32, #tpu.memory_space<vmem>>, %arg5: memref<1x32xf32, #tpu.memory_space<vmem>>, %arg6: memref<32x2xf32, #tpu.memory_space<vmem>>, %arg7: memref<2x32xf32, #tpu.memory_space<vmem>>, %arg8: memref<32x16xf32, #tpu.memory_space<vmem>>, %arg9: memref<1x16xf32, #tpu.memory_space<vmem>>, %arg10: memref<1x16xf32, #tpu.memory_space<vmem>>, %arg11: memref<1x16xf32, #tpu.memory_space<vmem>>, %arg12: memref<16x16xf32, #tpu.memory_space<vmem>>, %arg13: memref<1x16xf32, #tpu.memory_space<vmem>>, %arg14: memref<16x16xf32, #tpu.memory_space<vmem>>, %arg15: memref<1x16xf32, #tpu.memory_space<vmem>>, %arg16: memref<2x16xf32, #tpu.memory_space<vmem>>) attributes {dimension_semantics = [#tpu.dimension_semantics<parallel>], iteration_bounds = array<i64: 1>, scalar_prefetch = 0 : i64, scratch_operands = 0 : i64, tpu.core_type = #tpu.core_type<tc>, window_params = [{transform_indices = @transform_0, window_bounds = array<i64: 16, 32>}, {pipeline_mode = #tpu.pipeline_mode<synchronous>, transform_indices = @transform_1, window_bounds = array<i64: 1, 32>}, {pipeline_mode = #tpu.pipeline_mode<synchronous>, transform_indices = @transform_2, window_bounds = array<i64: 1, 32>}, {pipeline_mode = #tpu.pipeline_mode<synchronous>, transform_indices = @transform_3, window_bounds = array<i64: 32, 32>}, {pipeline_mode = #tpu.pipeline_mode<synchronous>, transform_indices = @transform_4, window_bounds = array<i64: 1, 32>}, {pipeline_mode = #tpu.pipeline_mode<synchronous>, transform_indices = @transform_5, window_bounds = array<i64: 32, 2>}, {pipeline_mode = #tpu.pipeline_mode<synchronous>, transform_indices = @transform_6, window_bounds = array<i64: 2, 32>}, {pipeline_mode = #tpu.pipeline_mode<synchronous>, transform_indices = @transform_7, window_bounds = array<i64: 32, 16>}, {pipeline_mode = #tpu.pipeline_mode<synchronous>, transform_indices = @transform_8, window_bounds = array<i64: 1, 16>}, {pipeline_mode = #tpu.pipeline_mode<synchronous>, transform_indices = @transform_9, window_bounds = array<i64: 1, 16>}, {pipeline_mode = #tpu.pipeline_mode<synchronous>, transform_indices = @transform_10, window_bounds = array<i64: 1, 16>}, {pipeline_mode = #tpu.pipeline_mode<synchronous>, transform_indices = @transform_11, window_bounds = array<i64: 16, 16>}, {pipeline_mode = #tpu.pipeline_mode<synchronous>, transform_indices = @transform_12, window_bounds = array<i64: 1, 16>}, {pipeline_mode = #tpu.pipeline_mode<synchronous>, transform_indices = @transform_13, window_bounds = array<i64: 16, 16>}, {pipeline_mode = #tpu.pipeline_mode<synchronous>, transform_indices = @transform_14, window_bounds = array<i64: 1, 16>}, {transform_indices = @transform_15, window_bounds = array<i64: 2, 16>}]} {
    %c0 = arith.constant 0 : index
    %c0_0 = arith.constant 0 : index
    %0 = vector.load %arg1[%c0, %c0_0] : memref<16x32xbf16, #tpu.memory_space<vmem>>, vector<16x32xbf16>
    %1 = arith.extf %0 : vector<16x32xbf16> to vector<16x32xf32>
    %c0_1 = arith.constant 0 : index
    %c0_2 = arith.constant 0 : index
    %2 = vector.load %arg2[%c0_1, %c0_2] : memref<1x32xf32, #tpu.memory_space<vmem>>, vector<1x32xf32>
    %c0_3 = arith.constant 0 : index
    %c0_4 = arith.constant 0 : index
    %3 = vector.load %arg3[%c0_3, %c0_4] : memref<1x32xf32, #tpu.memory_space<vmem>>, vector<1x32xf32>
    %cst = arith.constant dense<0.000000e+00> : vector<16xf32>
    %4 = vector.multi_reduction <add>, %1, %cst [1] : vector<16x32xf32> to vector<16xf32>
    %5 = vector.shape_cast %4 : vector<16xf32> to vector<16x1xf32>
    %cst_5 = arith.constant 3.200000e+01 : f32
    %6 = vector.broadcast %cst_5 : f32 to vector<16x1xf32>
    %7 = arith.divf %5, %6 : vector<16x1xf32>
    %8 = arith.mulf %1, %1 : vector<16x32xf32>
    %cst_6 = arith.constant dense<0.000000e+00> : vector<16xf32>
    %9 = vector.multi_reduction <add>, %8, %cst_6 [1] : vector<16x32xf32> to vector<16xf32>
    %10 = vector.shape_cast %9 : vector<16xf32> to vector<16x1xf32>
    %cst_7 = arith.constant 3.200000e+01 : f32
    %11 = vector.broadcast %cst_7 : f32 to vector<16x1xf32>
    %12 = arith.divf %10, %11 : vector<16x1xf32>
    %13 = arith.mulf %7, %7 : vector<16x1xf32>
    %14 = arith.subf %12, %13 : vector<16x1xf32>
    %15 = vector.broadcast %7 : vector<16x1xf32> to vector<16x32xf32>
    %16 = arith.subf %1, %15 : vector<16x32xf32>
    %cst_8 = arith.constant 9.99999974E-6 : f32
    %17 = vector.broadcast %cst_8 : f32 to vector<16x1xf32>
    %18 = arith.addf %14, %17 : vector<16x1xf32>
    %19 = math.rsqrt %18 : vector<16x1xf32>
    %20 = vector.broadcast %19 : vector<16x1xf32> to vector<16x32xf32>
    %21 = arith.mulf %16, %20 : vector<16x32xf32>
    %22 = vector.broadcast %2 : vector<1x32xf32> to vector<16x32xf32>
    %23 = arith.mulf %21, %22 : vector<16x32xf32>
    %24 = vector.broadcast %3 : vector<1x32xf32> to vector<16x32xf32>
    %25 = arith.addf %23, %24 : vector<16x32xf32>
    %c0_9 = arith.constant 0 : index
    %c0_10 = arith.constant 0 : index
    %26 = vector.load %arg4[%c0_9, %c0_10] : memref<32x32xf32, #tpu.memory_space<vmem>>, vector<32x32xf32>
    %cst_11 = arith.constant dense<0.000000e+00> : vector<16x32xf32>
    %27 = tpu.matmul %25, %26, %cst_11 {dimension_numbers = #tpu.dot_dimension_numbers<[1], [0], [0], [1], [0, 0, 1, 1], [], []>} : vector<16x32xf32>, vector<32x32xf32>, vector<16x32xf32> -> vector<16x32xf32>
    %c0_12 = arith.constant 0 : index
    %c0_13 = arith.constant 0 : index
    %28 = vector.load %arg5[%c0_12, %c0_13] : memref<1x32xf32, #tpu.memory_space<vmem>>, vector<1x32xf32>
    %29 = vector.broadcast %28 : vector<1x32xf32> to vector<16x32xf32>
    %30 = arith.addf %27, %29 : vector<16x32xf32>
    %c0_14 = arith.constant 0 : index
    %c0_15 = arith.constant 0 : index
    %31 = vector.load %arg6[%c0_14, %c0_15] : memref<32x2xf32, #tpu.memory_space<vmem>>, vector<32x2xf32>
    %cst_16 = arith.constant dense<0.000000e+00> : vector<16x2xf32>
    %32 = tpu.matmul %30, %31, %cst_16 {dimension_numbers = #tpu.dot_dimension_numbers<[1], [0], [0], [1], [0, 0, 1, 1], [], []>} : vector<16x32xf32>, vector<32x2xf32>, vector<16x2xf32> -> vector<16x2xf32>
    %33 = vector.shape_cast %32 : vector<16x2xf32> to vector<2x8x2xf32>
    %cst_17 = arith.constant dense<0xFF800000> : vector<2x2xf32>
    %34 = vector.multi_reduction <maximumf>, %33, %cst_17 [1] : vector<2x8x2xf32> to vector<2x2xf32>
    %35 = vector.shape_cast %34 : vector<2x2xf32> to vector<2x1x2xf32>
    %36 = vector.broadcast %35 : vector<2x1x2xf32> to vector<2x8x2xf32>
    %37 = arith.subf %33, %36 : vector<2x8x2xf32>
    %38 = math.exp %37 : vector<2x8x2xf32>
    %cst_18 = arith.constant dense<0.000000e+00> : vector<2x2xf32>
    %39 = vector.multi_reduction <add>, %38, %cst_18 [1] : vector<2x8x2xf32> to vector<2x2xf32>
    %40 = vector.shape_cast %39 : vector<2x2xf32> to vector<2x1x2xf32>
    %41 = tpu.reciprocal %40 {approx = true} : vector<2x1x2xf32> -> vector<2x1x2xf32>
    %42 = vector.broadcast %41 : vector<2x1x2xf32> to vector<2x8x2xf32>
    %43 = arith.mulf %38, %42 : vector<2x8x2xf32>
    %44 = vector.shape_cast %43 : vector<2x8x2xf32> to vector<16x2xf32>
    %c0_19 = arith.constant 0 : index
    %c0_20 = arith.constant 0 : index
    %45 = vector.load %arg7[%c0_19, %c0_20] : memref<2x32xf32, #tpu.memory_space<vmem>>, vector<2x32xf32>
    %cst_21 = arith.constant dense<0.000000e+00> : vector<16x32xf32>
    %46 = tpu.matmul %44, %45, %cst_21 {dimension_numbers = #tpu.dot_dimension_numbers<[1], [0], [0], [1], [0, 0, 1, 1], [], []>} : vector<16x2xf32>, vector<2x32xf32>, vector<16x32xf32> -> vector<16x32xf32>
    %47 = arith.mulf %46, %30 : vector<16x32xf32>
    %48 = vector.shape_cast %47 : vector<16x32xf32> to vector<2x8x32xf32>
    %cst_22 = arith.constant dense<0.000000e+00> : vector<2x32xf32>
    %49 = vector.multi_reduction <add>, %48, %cst_22 [1] : vector<2x8x32xf32> to vector<2x32xf32>
    %c0_23 = arith.constant 0 : index
    %c0_24 = arith.constant 0 : index
    %50 = vector.load %arg8[%c0_23, %c0_24] : memref<32x16xf32, #tpu.memory_space<vmem>>, vector<32x16xf32>
    %cst_25 = arith.constant dense<0.000000e+00> : vector<2x16xf32>
    %51 = tpu.matmul %49, %50, %cst_25 {dimension_numbers = #tpu.dot_dimension_numbers<[1], [0], [0], [1], [0, 0, 1, 1], [], []>} : vector<2x32xf32>, vector<32x16xf32>, vector<2x16xf32> -> vector<2x16xf32>
    %c0_26 = arith.constant 0 : index
    %c0_27 = arith.constant 0 : index
    %52 = vector.load %arg9[%c0_26, %c0_27] : memref<1x16xf32, #tpu.memory_space<vmem>>, vector<1x16xf32>
    %53 = vector.broadcast %52 : vector<1x16xf32> to vector<2x16xf32>
    %54 = arith.addf %51, %53 : vector<2x16xf32>
    %c0_28 = arith.constant 0 : index
    %c0_29 = arith.constant 0 : index
    %55 = vector.load %arg10[%c0_28, %c0_29] : memref<1x16xf32, #tpu.memory_space<vmem>>, vector<1x16xf32>
    %c0_30 = arith.constant 0 : index
    %c0_31 = arith.constant 0 : index
    %56 = vector.load %arg11[%c0_30, %c0_31] : memref<1x16xf32, #tpu.memory_space<vmem>>, vector<1x16xf32>
    %cst_32 = arith.constant dense<0.000000e+00> : vector<2xf32>
    %57 = vector.multi_reduction <add>, %54, %cst_32 [1] : vector<2x16xf32> to vector<2xf32>
    %58 = vector.shape_cast %57 : vector<2xf32> to vector<2x1xf32>
    %cst_33 = arith.constant 1.600000e+01 : f32
    %59 = vector.broadcast %cst_33 : f32 to vector<2x1xf32>
    %60 = arith.divf %58, %59 : vector<2x1xf32>
    %61 = arith.mulf %54, %54 : vector<2x16xf32>
    %cst_34 = arith.constant dense<0.000000e+00> : vector<2xf32>
    %62 = vector.multi_reduction <add>, %61, %cst_34 [1] : vector<2x16xf32> to vector<2xf32>
    %63 = vector.shape_cast %62 : vector<2xf32> to vector<2x1xf32>
    %cst_35 = arith.constant 1.600000e+01 : f32
    %64 = vector.broadcast %cst_35 : f32 to vector<2x1xf32>
    %65 = arith.divf %63, %64 : vector<2x1xf32>
    %66 = arith.mulf %60, %60 : vector<2x1xf32>
    %67 = arith.subf %65, %66 : vector<2x1xf32>
    %68 = vector.broadcast %60 : vector<2x1xf32> to vector<2x16xf32>
    %69 = arith.subf %54, %68 : vector<2x16xf32>
    %cst_36 = arith.constant 9.99999974E-6 : f32
    %70 = vector.broadcast %cst_36 : f32 to vector<2x1xf32>
    %71 = arith.addf %67, %70 : vector<2x1xf32>
    %72 = math.rsqrt %71 : vector<2x1xf32>
    %73 = vector.broadcast %72 : vector<2x1xf32> to vector<2x16xf32>
    %74 = arith.mulf %69, %73 : vector<2x16xf32>
    %75 = vector.broadcast %55 : vector<1x16xf32> to vector<2x16xf32>
    %76 = arith.mulf %74, %75 : vector<2x16xf32>
    %77 = vector.broadcast %56 : vector<1x16xf32> to vector<2x16xf32>
    %78 = arith.addf %76, %77 : vector<2x16xf32>
    %c0_37 = arith.constant 0 : index
    %c0_38 = arith.constant 0 : index
    %79 = vector.load %arg12[%c0_37, %c0_38] : memref<16x16xf32, #tpu.memory_space<vmem>>, vector<16x16xf32>
    %cst_39 = arith.constant dense<0.000000e+00> : vector<2x16xf32>
    %80 = tpu.matmul %78, %79, %cst_39 {dimension_numbers = #tpu.dot_dimension_numbers<[1], [0], [0], [1], [0, 0, 1, 1], [], []>} : vector<2x16xf32>, vector<16x16xf32>, vector<2x16xf32> -> vector<2x16xf32>
    %c0_40 = arith.constant 0 : index
    %c0_41 = arith.constant 0 : index
    %81 = vector.load %arg13[%c0_40, %c0_41] : memref<1x16xf32, #tpu.memory_space<vmem>>, vector<1x16xf32>
    %82 = vector.broadcast %81 : vector<1x16xf32> to vector<2x16xf32>
    %83 = arith.addf %80, %82 : vector<2x16xf32>
    %cst_42 = arith.constant 5.000000e-01 : f32
    %84 = vector.broadcast %cst_42 : f32 to vector<2x16xf32>
    %85 = arith.mulf %84, %83 : vector<2x16xf32>
    %86 = arith.mulf %83, %83 : vector<2x16xf32>
    %87 = arith.mulf %86, %83 : vector<2x16xf32>
    %cst_43 = arith.constant 4.471500e-02 : f32
    %88 = vector.broadcast %cst_43 : f32 to vector<2x16xf32>
    %89 = arith.mulf %88, %87 : vector<2x16xf32>
    %90 = arith.addf %83, %89 : vector<2x16xf32>
    %cst_44 = arith.constant 0.797884583 : f32
    %91 = vector.broadcast %cst_44 : f32 to vector<2x16xf32>
    %92 = arith.mulf %91, %90 : vector<2x16xf32>
    %93 = math.tanh %92 : vector<2x16xf32>
    %cst_45 = arith.constant 1.000000e+00 : f32
    %94 = vector.broadcast %cst_45 : f32 to vector<2x16xf32>
    %95 = arith.addf %94, %93 : vector<2x16xf32>
    %96 = arith.mulf %85, %95 : vector<2x16xf32>
    %c0_46 = arith.constant 0 : index
    %c0_47 = arith.constant 0 : index
    %97 = vector.load %arg14[%c0_46, %c0_47] : memref<16x16xf32, #tpu.memory_space<vmem>>, vector<16x16xf32>
    %cst_48 = arith.constant dense<0.000000e+00> : vector<2x16xf32>
    %98 = tpu.matmul %96, %97, %cst_48 {dimension_numbers = #tpu.dot_dimension_numbers<[1], [0], [0], [1], [0, 0, 1, 1], [], []>} : vector<2x16xf32>, vector<16x16xf32>, vector<2x16xf32> -> vector<2x16xf32>
    %c0_49 = arith.constant 0 : index
    %c0_50 = arith.constant 0 : index
    %99 = vector.load %arg15[%c0_49, %c0_50] : memref<1x16xf32, #tpu.memory_space<vmem>>, vector<1x16xf32>
    %100 = vector.broadcast %99 : vector<1x16xf32> to vector<2x16xf32>
    %101 = arith.addf %98, %100 : vector<2x16xf32>
    %102 = arith.addf %54, %101 : vector<2x16xf32>
    %c0_51 = arith.constant 0 : index
    %c0_52 = arith.constant 0 : index
    %103 = vector.load %arg16[%c0_51, %c0_52] : memref<2x16xf32, #tpu.memory_space<vmem>>, vector<2x16xf32>
    tpu.vector_store %arg16[%c0_51, %c0_52], %102 {strides = array<i32>} : memref<2x16xf32, #tpu.memory_space<vmem>>, vector<2x16xf32>,
    return
  }
  func.func @transform_0(%arg0: i32) -> (i32, i32) {
    %c0_i32 = arith.constant 0 : i32
    %c0_i32_0 = arith.constant 0 : i32
    return %arg0, %c0_i32 : i32, i32
  }
  func.func @transform_1(%arg0: i32) -> (i32, i32) {
    %c0_i32 = arith.constant 0 : i32
    %c0_i32_0 = arith.constant 0 : i32
    %c0_i32_1 = arith.constant 0 : i32
    return %c0_i32, %c0_i32_0 : i32, i32
  }
  func.func @transform_2(%arg0: i32) -> (i32, i32) {
    %c0_i32 = arith.constant 0 : i32
    %c0_i32_0 = arith.constant 0 : i32
    %c0_i32_1 = arith.constant 0 : i32
    return %c0_i32, %c0_i32_0 : i32, i32
  }
  func.func @transform_3(%arg0: i32) -> (i32, i32) {
    %c0_i32 = arith.constant 0 : i32
    %c0_i32_0 = arith.constant 0 : i32
    %c0_i32_1 = arith.constant 0 : i32
    return %c0_i32, %c0_i32_0 : i32, i32
  }
  func.func @transform_4(%arg0: i32) -> (i32, i32) {
    %c0_i32 = arith.constant 0 : i32
    %c0_i32_0 = arith.constant 0 : i32
    %c0_i32_1 = arith.constant 0 : i32
    return %c0_i32, %c0_i32_0 : i32, i32
  }
  func.func @transform_5(%arg0: i32) -> (i32, i32) {
    %c0_i32 = arith.constant 0 : i32
    %c0_i32_0 = arith.constant 0 : i32
    %c0_i32_1 = arith.constant 0 : i32
    return %c0_i32, %c0_i32_0 : i32, i32
  }
  func.func @transform_6(%arg0: i32) -> (i32, i32) {
    %c0_i32 = arith.constant 0 : i32
    %c0_i32_0 = arith.constant 0 : i32
    %c0_i32_1 = arith.constant 0 : i32
    return %c0_i32, %c0_i32_0 : i32, i32
  }
  func.func @transform_7(%arg0: i32) -> (i32, i32) {
    %c0_i32 = arith.constant 0 : i32
    %c0_i32_0 = arith.constant 0 : i32
    %c0_i32_1 = arith.constant 0 : i32
    return %c0_i32, %c0_i32_0 : i32, i32
  }
  func.func @transform_8(%arg0: i32) -> (i32, i32) {
    %c0_i32 = arith.constant 0 : i32
    %c0_i32_0 = arith.constant 0 : i32
    %c0_i32_1 = arith.constant 0 : i32
    return %c0_i32, %c0_i32_0 : i32, i32
  }
  func.func @transform_9(%arg0: i32) -> (i32, i32) {
    %c0_i32 = arith.constant 0 : i32
    %c0_i32_0 = arith.constant 0 : i32
    %c0_i32_1 = arith.constant 0 : i32
    return %c0_i32, %c0_i32_0 : i32, i32
  }
  func.func @transform_10(%arg0: i32) -> (i32, i32) {
    %c0_i32 = arith.constant 0 : i32
    %c0_i32_0 = arith.constant 0 : i32
    %c0_i32_1 = arith.constant 0 : i32
    return %c0_i32, %c0_i32_0 : i32, i32
  }
  func.func @transform_11(%arg0: i32) -> (i32, i32) {
    %c0_i32 = arith.constant 0 : i32
    %c0_i32_0 = arith.constant 0 : i32
    %c0_i32_1 = arith.constant 0 : i32
    return %c0_i32, %c0_i32_0 : i32, i32
  }
  func.func @transform_12(%arg0: i32) -> (i32, i32) {
    %c0_i32 = arith.constant 0 : i32
    %c0_i32_0 = arith.constant 0 : i32
    %c0_i32_1 = arith.constant 0 : i32
    return %c0_i32, %c0_i32_0 : i32, i32
  }
  func.func @transform_13(%arg0: i32) -> (i32, i32) {
    %c0_i32 = arith.constant 0 : i32
    %c0_i32_0 = arith.constant 0 : i32
    %c0_i32_1 = arith.constant 0 : i32
    return %c0_i32, %c0_i32_0 : i32, i32
  }
  func.func @transform_14(%arg0: i32) -> (i32, i32) {
    %c0_i32 = arith.constant 0 : i32
    %c0_i32_0 = arith.constant 0 : i32
    %c0_i32_1 = arith.constant 0 : i32
    return %c0_i32, %c0_i32_0 : i32, i32
  }
  func.func @transform_15(%arg0: i32) -> (i32, i32) {
    %c0_i32 = arith.constant 0 : i32
    %c0_i32_0 = arith.constant 0 : i32
    return %arg0, %c0_i32 : i32, i32
  }
}

module attributes {stable_mosaic.version = 11 : i64} {
  func.func @classification_decoder_kernel(%arg0: i32, %arg1: memref<16x32xbf16, #tpu.memory_space<vmem>>, %arg2: memref<1x32xf32, #tpu.memory_space<vmem>>, %arg3: memref<1x32xf32, #tpu.memory_space<vmem>>, %arg4: memref<32x32xf32, #tpu.memory_space<vmem>>, %arg5: memref<1x32xf32, #tpu.memory_space<vmem>>, %arg6: memref<32x2xf32, #tpu.memory_space<vmem>>, %arg7: memref<2x32xf32, #tpu.memory_space<vmem>>, %arg8: memref<32x16xf32, #tpu.memory_space<vmem>>, %arg9: memref<1x16xf32, #tpu.memory_space<vmem>>, %arg10: memref<1x16xf32, #tpu.memory_space<vmem>>, %arg11: memref<1x16xf32, #tpu.memory_space<vmem>>, %arg12: memref<16x16xf32, #tpu.memory_space<vmem>>, %arg13: memref<1x16xf32, #tpu.memory_space<vmem>>, %arg14: memref<16x16xf32, #tpu.memory_space<vmem>>, %arg15: memref<1x16xf32, #tpu.memory_space<vmem>>, %arg16: memref<2x16xf32, #tpu.memory_space<vmem>>) attributes {dimension_semantics = [#tpu.dimension_semantics<parallel>], iteration_bounds = array<i64: 1>, scalar_prefetch = 0 : i64, scratch_operands = 0 : i64, tpu.core_type = #tpu.core_type<tc>, window_params = [{transform_indices = @transform_0, window_bounds = array<i64: 16, 32>}, {pipeline_mode = #tpu.pipeline_mode<synchronous>, transform_indices = @transform_1, window_bounds = array<i64: 1, 32>}, {pipeline_mode = #tpu.pipeline_mode<synchronous>, transform_indices = @transform_2, window_bounds = array<i64: 1, 32>}, {pipeline_mode = #tpu.pipeline_mode<synchronous>, transform_indices = @transform_3, window_bounds = array<i64: 32, 32>}, {pipeline_mode = #tpu.pipeline_mode<synchronous>, transform_indices = @transform_4, window_bounds = array<i64: 1, 32>}, {pipeline_mode = #tpu.pipeline_mode<synchronous>, transform_indices = @transform_5, window_bounds = array<i64: 32, 2>}, {pipeline_mode = #tpu.pipeline_mode<synchronous>, transform_indices = @transform_6, window_bounds = array<i64: 2, 32>}, {pipeline_mode = #tpu.pipeline_mode<synchronous>, transform_indices = @transform_7, window_bounds = array<i64: 32, 16>}, {pipeline_mode = #tpu.pipeline_mode<synchronous>, transform_indices = @transform_8, window_bounds = array<i64: 1, 16>}, {pipeline_mode = #tpu.pipeline_mode<synchronous>, transform_indices = @transform_9, window_bounds = array<i64: 1, 16>}, {pipeline_mode = #tpu.pipeline_mode<synchronous>, transform_indices = @transform_10, window_bounds = array<i64: 1, 16>}, {pipeline_mode = #tpu.pipeline_mode<synchronous>, transform_indices = @transform_11, window_bounds = array<i64: 16, 16>}, {pipeline_mode = #tpu.pipeline_mode<synchronous>, transform_indices = @transform_12, window_bounds = array<i64: 1, 16>}, {pipeline_mode = #tpu.pipeline_mode<synchronous>, transform_indices = @transform_13, window_bounds = array<i64: 16, 16>}, {pipeline_mode = #tpu.pipeline_mode<synchronous>, transform_indices = @transform_14, window_bounds = array<i64: 1, 16>}, {transform_indices = @transform_15, window_bounds = array<i64: 2, 16>}]} {
    %c0 = arith.constant 0 : index
    %c0_0 = arith.constant 0 : index
    %0 = vector.load %arg1[%c0, %c0_0] : memref<16x32xbf16, #tpu.memory_space<vmem>>, vector<16x32xbf16>
    %1 = arith.extf %0 : vector<16x32xbf16> to vector<16x32xf32>
    %c0_1 = arith.constant 0 : index
    %c0_2 = arith.constant 0 : index
    %2 = vector.load %arg2[%c0_1, %c0_2] : memref<1x32xf32, #tpu.memory_space<vmem>>, vector<1x32xf32>
    %c0_3 = arith.constant 0 : index
    %c0_4 = arith.constant 0 : index
    %3 = vector.load %arg3[%c0_3, %c0_4] : memref<1x32xf32, #tpu.memory_space<vmem>>, vector<1x32xf32>
    %cst = arith.constant dense<0.000000e+00> : vector<16xf32>
    %4 = vector.multi_reduction <add>, %1, %cst [1] : vector<16x32xf32> to vector<16xf32>
    %5 = vector.shape_cast %4 : vector<16xf32> to vector<16x1xf32>
    %cst_5 = arith.constant 3.200000e+01 : f32
    %6 = vector.broadcast %cst_5 : f32 to vector<16x1xf32>
    %7 = arith.divf %5, %6 : vector<16x1xf32>
    %8 = arith.mulf %1, %1 : vector<16x32xf32>
    %cst_6 = arith.constant dense<0.000000e+00> : vector<16xf32>
    %9 = vector.multi_reduction <add>, %8, %cst_6 [1] : vector<16x32xf32> to vector<16xf32>
    %10 = vector.shape_cast %9 : vector<16xf32> to vector<16x1xf32>
    %cst_7 = arith.constant 3.200000e+01 : f32
    %11 = vector.broadcast %cst_7 : f32 to vector<16x1xf32>
    %12 = arith.divf %10, %11 : vector<16x1xf32>
    %13 = arith.mulf %7, %7 : vector<16x1xf32>
    %14 = arith.subf %12, %13 : vector<16x1xf32>
    %15 = vector.broadcast %7 : vector<16x1xf32> to vector<16x32xf32>
    %16 = arith.subf %1, %15 : vector<16x32xf32>
    %cst_8 = arith.constant 9.99999974E-6 : f32
    %17 = vector.broadcast %cst_8 : f32 to vector<16x1xf32>
    %18 = arith.addf %14, %17 : vector<16x1xf32>
    %19 = math.rsqrt %18 : vector<16x1xf32>
    %20 = vector.broadcast %19 : vector<16x1xf32> to vector<16x32xf32>
    %21 = arith.mulf %16, %20 : vector<16x32xf32>
    %22 = vector.broadcast %2 : vector<1x32xf32> to vector<16x32xf32>
    %23 = arith.mulf %21, %22 : vector<16x32xf32>
    %24 = vector.broadcast %3 : vector<1x32xf32> to vector<16x32xf32>
    %25 = arith.addf %23, %24 : vector<16x32xf32>
    %c0_9 = arith.constant 0 : index
    %c0_10 = arith.constant 0 : index
    %26 = vector.load %arg4[%c0_9, %c0_10] : memref<32x32xf32, #tpu.memory_space<vmem>>, vector<32x32xf32>
    %cst_11 = arith.constant dense<0.000000e+00> : vector<16x32xf32>
    %27 = tpu.matmul %25, %26, %cst_11 {dimension_numbers = #tpu.dot_dimension_numbers<[1], [0], [0], [1], [0, 0, 1, 1], [], []>} : vector<16x32xf32>, vector<32x32xf32>, vector<16x32xf32> -> vector<16x32xf32>
    %c0_12 = arith.constant 0 : index
    %c0_13 = arith.constant 0 : index
    %28 = vector.load %arg5[%c0_12, %c0_13] : memref<1x32xf32, #tpu.memory_space<vmem>>, vector<1x32xf32>
    %29 = vector.broadcast %28 : vector<1x32xf32> to vector<16x32xf32>
    %30 = arith.addf %27, %29 : vector<16x32xf32>
    %c0_14 = arith.constant 0 : index
    %c0_15 = arith.constant 0 : index
    %31 = vector.load %arg6[%c0_14, %c0_15] : memref<32x2xf32, #tpu.memory_space<vmem>>, vector<32x2xf32>
    %cst_16 = arith.constant dense<0.000000e+00> : vector<16x2xf32>
    %32 = tpu.matmul %30, %31, %cst_16 {dimension_numbers = #tpu.dot_dimension_numbers<[1], [0], [0], [1], [0, 0, 1, 1], [], []>} : vector<16x32xf32>, vector<32x2xf32>, vector<16x2xf32> -> vector<16x2xf32>
    %33 = vector.shape_cast %32 : vector<16x2xf32> to vector<2x8x2xf32>
    %cst_17 = arith.constant dense<0xFF800000> : vector<2x2xf32>
    %34 = vector.multi_reduction <maximumf>, %33, %cst_17 [1] : vector<2x8x2xf32> to vector<2x2xf32>
    %35 = vector.shape_cast %34 : vector<2x2xf32> to vector<2x1x2xf32>
    %36 = vector.broadcast %35 : vector<2x1x2xf32> to vector<2x8x2xf32>
    %37 = arith.subf %33, %36 : vector<2x8x2xf32>
    %38 = math.exp %37 : vector<2x8x2xf32>
    %cst_18 = arith.constant dense<0.000000e+00> : vector<2x2xf32>
    %39 = vector.multi_reduction <add>, %38, %cst_18 [1] : vector<2x8x2xf32> to vector<2x2xf32>
    %40 = vector.shape_cast %39 : vector<2x2xf32> to vector<2x1x2xf32>
    %41 = tpu.reciprocal %40 {approx = true} : vector<2x1x2xf32> -> vector<2x1x2xf32>
    %42 = vector.broadcast %41 : vector<2x1x2xf32> to vector<2x8x2xf32>
    %43 = arith.mulf %38, %42 : vector<2x8x2xf32>
    %44 = vector.shape_cast %43 : vector<2x8x2xf32> to vector<16x2xf32>
    %c0_19 = arith.constant 0 : index
    %c0_20 = arith.constant 0 : index
    %45 = vector.load %arg7[%c0_19, %c0_20] : memref<2x32xf32, #tpu.memory_space<vmem>>, vector<2x32xf32>
    %cst_21 = arith.constant dense<0.000000e+00> : vector<16x32xf32>
    %46 = tpu.matmul %44, %45, %cst_21 {dimension_numbers = #tpu.dot_dimension_numbers<[1], [0], [0], [1], [0, 0, 1, 1], [], []>} : vector<16x2xf32>, vector<2x32xf32>, vector<16x32xf32> -> vector<16x32xf32>
    %47 = arith.mulf %46, %30 : vector<16x32xf32>
    %48 = vector.shape_cast %47 : vector<16x32xf32> to vector<2x8x32xf32>
    %cst_22 = arith.constant dense<0.000000e+00> : vector<2x32xf32>
    %49 = vector.multi_reduction <add>, %48, %cst_22 [1] : vector<2x8x32xf32> to vector<2x32xf32>
    %c0_23 = arith.constant 0 : index
    %c0_24 = arith.constant 0 : index
    %50 = vector.load %arg8[%c0_23, %c0_24] : memref<32x16xf32, #tpu.memory_space<vmem>>, vector<32x16xf32>
    %cst_25 = arith.constant dense<0.000000e+00> : vector<2x16xf32>
    %51 = tpu.matmul %49, %50, %cst_25 {dimension_numbers = #tpu.dot_dimension_numbers<[1], [0], [0], [1], [0, 0, 1, 1], [], []>} : vector<2x32xf32>, vector<32x16xf32>, vector<2x16xf32> -> vector<2x16xf32>
    %c0_26 = arith.constant 0 : index
    %c0_27 = arith.constant 0 : index
    %52 = vector.load %arg9[%c0_26, %c0_27] : memref<1x16xf32, #tpu.memory_space<vmem>>, vector<1x16xf32>
    %53 = vector.broadcast %52 : vector<1x16xf32> to vector<2x16xf32>
    %54 = arith.addf %51, %53 : vector<2x16xf32>
    %c0_28 = arith.constant 0 : index
    %c0_29 = arith.constant 0 : index
    %55 = vector.load %arg10[%c0_28, %c0_29] : memref<1x16xf32, #tpu.memory_space<vmem>>, vector<1x16xf32>
    %c0_30 = arith.constant 0 : index
    %c0_31 = arith.constant 0 : index
    %56 = vector.load %arg11[%c0_30, %c0_31] : memref<1x16xf32, #tpu.memory_space<vmem>>, vector<1x16xf32>
    %cst_32 = arith.constant dense<0.000000e+00> : vector<2xf32>
    %57 = vector.multi_reduction <add>, %54, %cst_32 [1] : vector<2x16xf32> to vector<2xf32>
    %58 = vector.shape_cast %57 : vector<2xf32> to vector<2x1xf32>
    %cst_33 = arith.constant 1.600000e+01 : f32
    %59 = vector.broadcast %cst_33 : f32 to vector<2x1xf32>
    %60 = arith.divf %58, %59 : vector<2x1xf32>
    %61 = arith.mulf %54, %54 : vector<2x16xf32>
    %cst_34 = arith.constant dense<0.000000e+00> : vector<2xf32>
    %62 = vector.multi_reduction <add>, %61, %cst_34 [1] : vector<2x16xf32> to vector<2xf32>
    %63 = vector.shape_cast %62 : vector<2xf32> to vector<2x1xf32>
    %cst_35 = arith.constant 1.600000e+01 : f32
    %64 = vector.broadcast %cst_35 : f32 to vector<2x1xf32>
    %65 = arith.divf %63, %64 : vector<2x1xf32>
    %66 = arith.mulf %60, %60 : vector<2x1xf32>
    %67 = arith.subf %65, %66 : vector<2x1xf32>
    %68 = vector.broadcast %60 : vector<2x1xf32> to vector<2x16xf32>
    %69 = arith.subf %54, %68 : vector<2x16xf32>
    %cst_36 = arith.constant 9.99999974E-6 : f32
    %70 = vector.broadcast %cst_36 : f32 to vector<2x1xf32>
    %71 = arith.addf %67, %70 : vector<2x1xf32>
    %72 = math.rsqrt %71 : vector<2x1xf32>
    %73 = vector.broadcast %72 : vector<2x1xf32> to vector<2x16xf32>
    %74 = arith.mulf %69, %73 : vector<2x16xf32>
    %75 = vector.broadcast %55 : vector<1x16xf32> to vector<2x16xf32>
    %76 = arith.mulf %74, %75 : vector<2x16xf32>
    %77 = vector.broadcast %56 : vector<1x16xf32> to vector<2x16xf32>
    %78 = arith.addf %76, %77 : vector<2x16xf32>
    %c0_37 = arith.constant 0 : index
    %c0_38 = arith.constant 0 : index
    %79 = vector.load %arg12[%c0_37, %c0_38] : memref<16x16xf32, #tpu.memory_space<vmem>>, vector<16x16xf32>
    %cst_39 = arith.constant dense<0.000000e+00> : vector<2x16xf32>
    %80 = tpu.matmul %78, %79, %cst_39 {dimension_numbers = #tpu.dot_dimension_numbers<[1], [0], [0], [1], [0, 0, 1, 1], [], []>} : vector<2x16xf32>, vector<16x16xf32>, vector<2x16xf32> -> vector<2x16xf32>
    %c0_40 = arith.constant 0 : index
    %c0_41 = arith.constant 0 : index
    %81 = vector.load %arg13[%c0_40, %c0_41] : memref<1x16xf32, #tpu.memory_space<vmem>>, vector<1x16xf32>
    %82 = vector.broadcast %81 : vector<1x16xf32> to vector<2x16xf32>
    %83 = arith.addf %80, %82 : vector<2x16xf32>
    %cst_42 = arith.constant 5.000000e-01 : f32
    %84 = vector.broadcast %cst_42 : f32 to vector<2x16xf32>
    %85 = arith.mulf %84, %83 : vector<2x16xf32>
    %86 = arith.mulf %83, %83 : vector<2x16xf32>
    %87 = arith.mulf %86, %83 : vector<2x16xf32>
    %cst_43 = arith.constant 4.471500e-02 : f32
    %88 = vector.broadcast %cst_43 : f32 to vector<2x16xf32>
    %89 = arith.mulf %88, %87 : vector<2x16xf32>
    %90 = arith.addf %83, %89 : vector<2x16xf32>
    %cst_44 = arith.constant 0.797884583 : f32
    %91 = vector.broadcast %cst_44 : f32 to vector<2x16xf32>
    %92 = arith.mulf %91, %90 : vector<2x16xf32>
    %93 = math.tanh %92 : vector<2x16xf32>
    %cst_45 = arith.constant 1.000000e+00 : f32
    %94 = vector.broadcast %cst_45 : f32 to vector<2x16xf32>
    %95 = arith.addf %94, %93 : vector<2x16xf32>
    %96 = arith.mulf %85, %95 : vector<2x16xf32>
    %c0_46 = arith.constant 0 : index
    %c0_47 = arith.constant 0 : index
    %97 = vector.load %arg14[%c0_46, %c0_47] : memref<16x16xf32, #tpu.memory_space<vmem>>, vector<16x16xf32>
    %cst_48 = arith.constant dense<0.000000e+00> : vector<2x16xf32>
    %98 = tpu.matmul %96, %97, %cst_48 {dimension_numbers = #tpu.dot_dimension_numbers<[1], [0], [0], [1], [0, 0, 1, 1], [], []>} : vector<2x16xf32>, vector<16x16xf32>, vector<2x16xf32> -> vector<2x16xf32>
    %c0_49 = arith.constant 0 : index
    %c0_50 = arith.constant 0 : index
    %99 = vector.load %arg15[%c0_49, %c0_50] : memref<1x16xf32, #tpu.memory_space<vmem>>, vector<1x16xf32>
    %100 = vector.broadcast %99 : vector<1x16xf32> to vector<2x16xf32>
    %101 = arith.addf %98, %100 : vector<2x16xf32>
    %102 = arith.addf %54, %101 : vector<2x16xf32>
    %c0_51 = arith.constant 0 : index
    %c0_52 = arith.constant 0 : index
    %103 = vector.load %arg16[%c0_51, %c0_52] : memref<2x16xf32, #tpu.memory_space<vmem>>, vector<2x16xf32>
    tpu.vector_store %arg16[%c0_51, %c0_52], %102 {strides = array<i32>} : memref<2x16xf32, #tpu.memory_space<vmem>>, vector<2x16xf32>,
    return
  }
  func.func @transform_0(%arg0: i32) -> (i32, i32) {
    %c0_i32 = arith.constant 0 : i32
    %c0_i32_0 = arith.constant 0 : i32
    return %arg0, %c0_i32 : i32, i32
  }
  func.func @transform_1(%arg0: i32) -> (i32, i32) {
    %c0_i32 = arith.constant 0 : i32
    %c0_i32_0 = arith.constant 0 : i32
    %c0_i32_1 = arith.constant 0 : i32
    return %c0_i32, %c0_i32_0 : i32, i32
  }
  func.func @transform_2(%arg0: i32) -> (i32, i32) {
    %c0_i32 = arith.constant 0 : i32
    %c0_i32_0 = arith.constant 0 : i32
    %c0_i32_1 = arith.constant 0 : i32
    return %c0_i32, %c0_i32_0 : i32, i32
  }
  func.func @transform_3(%arg0: i32) -> (i32, i32) {
    %c0_i32 = arith.constant 0 : i32
    %c0_i32_0 = arith.constant 0 : i32
    %c0_i32_1 = arith.constant 0 : i32
    return %c0_i32, %c0_i32_0 : i32, i32
  }
  func.func @transform_4(%arg0: i32) -> (i32, i32) {
    %c0_i32 = arith.constant 0 : i32
    %c0_i32_0 = arith.constant 0 : i32
    %c0_i32_1 = arith.constant 0 : i32
    return %c0_i32, %c0_i32_0 : i32, i32
  }
  func.func @transform_5(%arg0: i32) -> (i32, i32) {
    %c0_i32 = arith.constant 0 : i32
    %c0_i32_0 = arith.constant 0 : i32
    %c0_i32_1 = arith.constant 0 : i32
    return %c0_i32, %c0_i32_0 : i32, i32
  }
  func.func @transform_6(%arg0: i32) -> (i32, i32) {
    %c0_i32 = arith.constant 0 : i32
    %c0_i32_0 = arith.constant 0 : i32
    %c0_i32_1 = arith.constant 0 : i32
    return %c0_i32, %c0_i32_0 : i32, i32
  }
  func.func @transform_7(%arg0: i32) -> (i32, i32) {
    %c0_i32 = arith.constant 0 : i32
    %c0_i32_0 = arith.constant 0 : i32
    %c0_i32_1 = arith.constant 0 : i32
    return %c0_i32, %c0_i32_0 : i32, i32
  }
  func.func @transform_8(%arg0: i32) -> (i32, i32) {
    %c0_i32 = arith.constant 0 : i32
    %c0_i32_0 = arith.constant 0 : i32
    %c0_i32_1 = arith.constant 0 : i32
    return %c0_i32, %c0_i32_0 : i32, i32
  }
  func.func @transform_9(%arg0: i32) -> (i32, i32) {
    %c0_i32 = arith.constant 0 : i32
    %c0_i32_0 = arith.constant 0 : i32
    %c0_i32_1 = arith.constant 0 : i32
    return %c0_i32, %c0_i32_0 : i32, i32
  }
  func.func @transform_10(%arg0: i32) -> (i32, i32) {
    %c0_i32 = arith.constant 0 : i32
    %c0_i32_0 = arith.constant 0 : i32
    %c0_i32_1 = arith.constant 0 : i32
    return %c0_i32, %c0_i32_0 : i32, i32
  }
  func.func @transform_11(%arg0: i32) -> (i32, i32) {
    %c0_i32 = arith.constant 0 : i32
    %c0_i32_0 = arith.constant 0 : i32
    %c0_i32_1 = arith.constant 0 : i32
    return %c0_i32, %c0_i32_0 : i32, i32
  }
  func.func @transform_12(%arg0: i32) -> (i32, i32) {
    %c0_i32 = arith.constant 0 : i32
    %c0_i32_0 = arith.constant 0 : i32
    %c0_i32_1 = arith.constant 0 : i32
    return %c0_i32, %c0_i32_0 : i32, i32
  }
  func.func @transform_13(%arg0: i32) -> (i32, i32) {
    %c0_i32 = arith.constant 0 : i32
    %c0_i32_0 = arith.constant 0 : i32
    %c0_i32_1 = arith.constant 0 : i32
    return %c0_i32, %c0_i32_0 : i32, i32
  }
  func.func @transform_14(%arg0: i32) -> (i32, i32) {
    %c0_i32 = arith.constant 0 : i32
    %c0_i32_0 = arith.constant 0 : i32
    %c0_i32_1 = arith.constant 0 : i32
    return %c0_i32, %c0_i32_0 : i32, i32
  }
  func.func @transform_15(%arg0: i32) -> (i32, i32) {
    %c0_i32 = arith.constant 0 : i32
    %c0_i32_0 = arith.constant 0 : i32
    return %arg0, %c0_i32 : i32, i32
  }
}

</mosaic_0001>

<bundles_post_ra>
// kernel: tpu_custom_call.1
= control target key start
LH: loop header
LB: loop body
LE: loop exit
PB: predicated region body
PF: predicated region fallthrough
CT: control target
= control target key end

     0   :  { %20 = vsyncpa [#allocation3], 0  ;;  %s1166_s0 = inlined_call_operand.hbm [shape: bf16[16,32], index: 0, kind: input, shape index: {}]   ;;  %s1167_s1 = inlined_call_operand.vmem [shape: f32[1,32], index: 1, kind: input, shape index: {}]   ;;  %s1168_s2 = inlined_call_operand.vmem [shape: f32[1,32], index: 2, kind: input, shape index: {}]   ;;  %s1169_s3 = inlined_call_operand.vmem [shape: f32[32,32], index: 3, kind: input, shape index: {}]   ;;  %s1170_s4 = inlined_call_operand.vmem [shape: f32[1,32], index: 4, kind: input, shape index: {}]   ;;  %s1171_s5 = inlined_call_operand.vmem [shape: f32[32,2], index: 5, kind: input, shape index: {}]   ;;  %s1172_s6 = inlined_call_operand.vmem [shape: f32[2,32], index: 6, kind: input, shape index: {}]   ;;  %s1173_s7 = inlined_call_operand.vmem [shape: f32[32,16], index: 7, kind: input, shape index: {}]   ;;  %s1174_s8 = inlined_call_operand.vmem [shape: f32[1,16], index: 8, kind: input, shape index: {}]   ;;  %s1175_s9 = inlined_call_operand.vmem [shape: f32[1,16], index: 9, kind: input, shape index: {}]   ;;  %s1176_s10 = inlined_call_operand.vmem [shape: f32[1,16], index: 10, kind: input, shape index: {}]   ;;  %s1177_s11 = inlined_call_operand.vmem [shape: f32[16,16], index: 11, kind: input, shape index: {}]   ;;  %s1178_s12 = inlined_call_operand.vmem [shape: f32[1,16], index: 12, kind: input, shape index: {}]   ;;  %s1179_s13 = inlined_call_operand.vmem [shape: f32[16,16], index: 13, kind: input, shape index: {}]   ;;  %s1180_s14 = inlined_call_operand.vmem [shape: f32[1,16], index: 14, kind: input, shape index: {}]   ;;  %s1181_s15 = inlined_call_operand.hbm [shape: f32[2,16], index: 15, kind: output, shape index: {}]  }
   0x1   :  { %21 = vsyncpa [#allocation4], 0  ;;  %s947_s18 = smov [#allocation2]   ;;  %s899_s22 = scalar_lea.hbm %s1166_s0, 128 }
   0x2   :  { %s27_s19 = sshll.u32 %s947_s18, 4  ;;  %p900_p0 = scmp.ne.s32.totalorder %s1166_s0, %s899_s22  ;;  %s28_s19 = int_to_ptr.vmem [resolvable:$true] %s27_s19 }
   0x3   :  { %p903_p1 = scmp.lt.u32.totalorder %s899_s22, %s1166_s0 }
   0x5   :  { %p905_p2 = pnand %p903_p1, %p900_p0 }
   0x7   :  { %908 = shalt.err (!%p905_p2)
}
   0x8   :  { %s909_s27 = scalar_lea.vmem %s28_s19, 128  ;;  %p914_p4 = scmp.lt.s32.totalorder %s28_s19, %s28_s19 }
   0x9   :  { %p910_p3 = scmp.ne.s32.totalorder %s28_s19, %s909_s27  ;;  %p915_p5 = scmp.lt.s32.totalorder %s909_s27, %s909_s27 }
   0xb   :  { %p916_p6 = por %p915_p5, %p914_p4 }
   0xd   :  { %p917_p7 = pnand %p916_p6, %p910_p3 }
   0xf   :  { %920 = shalt.err (!%p917_p7)
}
  0x10   :  { %s948_s28 = smov 64   ;;  %s949_s29 = smov 4  }
  0x11   :  { %33 = dma.hbm_to_vmem [thread:$0]  %s1166_s0, 128, %s28_s19, [#allocation3], %s948_s28, %s948_s28, %s949_s29  }
  0x12   :  { %943 = dma.done.wait [#allocation3], 128  }
  0x13   :  { %944 = vsyncadd [#allocation3], 4294967168  ;;  %v767_v0 = vld [vmem:[#allocation2] sm:$0xff]   ;;  %vm71_vm0 = vcmask 261120   ;;  %v120_v10 = vld [vmem:[%s1169_s3 + $0x8] sm:$0xff]  ;;  %vm342_vm1 = vcmask 1041408  }
  0x14   :  { %v768_v1 = vunpack.c.l.bf16 %v767_v0  ;;  %v769_v2 = vunpack.c.h.bf16 %v767_v0  ;;  %v119_v9 = vld [vmem:[%s1169_s3] sm:$0xff]  ;;  %v121_v11 = vld [vmem:[%s1169_s3 + $0x10] sm:$0xff]  ;;  %v122_v13 = vld [vmem:[%s1169_s3 + $0x18] sm:$0xff]  ;;  %vm296_vm2 = vcmask 15360   ;;  %vm951_vm3 = vmmov 0  }
  0x15   :  { %v848_v12 = vpack.c.bf16 %v120_v10, %v119_v9  ;;  %v852_v14 = vpack.c.bf16 %v122_v13, %v121_v11  ;;  %v211_v15 = vld [vmem:[%s1171_s5] sm:$0xff]  ;;  %v212_v16 = vld [vmem:[%s1171_s5 + $0x8] sm:$0xff]  ;;  %v213_v44 = vld [vmem:[%s1171_s5 + $0x10] sm:$0xff]  ;;  %vm450_vm4 = vcmask 1041409   ;;  %vm526_vm5 = vcmask 123904  }
  0x16   :  { %v72_v3 = vsel %vm71_vm0, %v768_v1, 0.0  ;;  %v81_v4 = vmul.f32 %v768_v1, %v768_v1  ;;  %v82_v5 = vmul.f32 %v769_v2, %v769_v2  ;;  %v75_v7 = vsel %vm71_vm0, %v769_v2, 0.0  ;;  %v748_v34 = vld [vmem:[%s1167_s1] ss:$0 sm:$0xff]  ;;  %v214_v45 = vld [vmem:[%s1171_s5 + $0x18] sm:$0xff] }
  0x17   :  { %73 = vadd.xlane.f32.xlu0 %v72_v3  ;;  %849 = vmatprep.subr.bf16.mxu0 %v848_v12  ;;  %v856_v17 = vpack.c.bf16 %v212_v16, %v211_v15  ;;  %v749_v36 = vld [vmem:[%s1168_s2] ss:$0 sm:$0xff]  ;;  %v860_v46 = vpack.c.bf16 %v214_v45, %v213_v44  ;;  %vm566_vm6 = vcmask 130048  }
  0x18   :  { %v83_v6 = vsel %vm71_vm0, %v81_v4, 0.0  ;;  %v86_v8 = vsel %vm71_vm0, %v82_v5, 0.0  ;;  %851 = vmatpush3.bf16.msra.mxu0 %v848_v12  ;;  %v750_v47 = vld [vmem:[%s1170_s4] ss:$0 sm:$0xff] }
  0x19   :  { %84 = vadd.xlane.f32.xlu1 %v83_v6  ;;  %853 = vmatprep.subr.bf16.mxu0 %v852_v14  ;;  %v335_v52 = vld [vmem:[%s1172_s6] sm:$0x3] }
  0x1a   :  { %857 = vmatprep.subr.bf16.mxu1 %v856_v17 }
  0x1b   :  { %76 = vadd.xlane.f32.xlu0 %v75_v7  ;;  %859 = vmatpush3.bf16.msra.mxu1 %v856_v17 }
  0x1c   :  { %855 = vmatpush3.bf16.msra.mxu0 %v852_v14  ;;  %861 = vmatprep.subr.bf16.mxu1 %v860_v46 }
  0x1d   :  { %87 = vadd.xlane.f32.xlu1 %v86_v8  ;;  %818 = vmatprep.subr.msk.mxu0 %vm342_vm1, %v335_v52 }
  0x1f   :  { %863 = vmatpush3.bf16.msra.mxu1 %v860_v46 }
  0xa4   :  { %v74_v18 = vpop.xlane.xlu0 %73 }
  0xa5   :  { %v79_v19 = vmul.f32 0.03125, %v74_v18 }
  0xa6   :  { %v85_v20 = vpop.xlane.xlu1 %84 }
  0xa7   :  { %v91_v21 = vmul.f32 %v79_v19, %v79_v19  ;;  %v89_v22 = vmul.f32 0.03125, %v85_v20  ;;  %v95_v32 = vsub.f32 %v768_v1, %v79_v19 }
  0xa8   :  { %v77_v23 = vpop.xlane.xlu0 %76 }
  0xa9   :  { %v93_v24 = vsub.f32 %v89_v22, %v91_v21  ;;  %v80_v25 = vmul.f32 0.03125, %v77_v23 }
  0xaa   :  { %v88_v26 = vpop.xlane.xlu1 %87 }
  0xab   :  { %v97_v27 = vadd.f32 1e-05, %v93_v24  ;;  %v92_v28 = vmul.f32 %v80_v25, %v80_v25  ;;  %v90_v29 = vmul.f32 0.03125, %v88_v26  ;;  %v96_v37 = vsub.f32 %v769_v2, %v80_v25 }
  0xad   :  { %883 = vrsqrt.f32 %v97_v27  ;;  %v94_v30 = vsub.f32 %v90_v29, %v92_v28  ;;  %v437_v29 = vld [vmem:[%s1173_s7] sm:$0xff] }
  0xaf   :  { %v98_v31 = vadd.f32 1e-05, %v94_v30  ;;  %v438_v30 = vld [vmem:[%s1173_s7 + $0x8] sm:$0xff] }
  0xb1   :  { %885 = vrsqrt.f32 %v98_v31  ;;  %v865_v31 = vpack.c.bf16 %v438_v30, %v437_v29 }
  0xb7   :  { %v884_v33 = vpop.eup %883 }
  0xb8   :  { %v101_v35 = vmul.f32 %v884_v33, %v95_v32  ;;  %v950_v32 = vmov 0.0|0.0   ;;  %v439_v33 = vld [vmem:[%s1173_s7 + $0x10] sm:$0xff] }
  0xb9   :  { %864 = vmatprep.subr.bf16.mxu1 %v950_v32 }
  0xba   :  { %v109_v38 = vmul.f32 %v748_v34, %v101_v35 }
  0xbb   :  { %v886_v39 = vpop.eup %885 }
  0xbc   :  { %v102_v40 = vmul.f32 %v886_v39, %v96_v37  ;;  %v117_v41 = vadd.f32 %v749_v36, %v109_v38 }
  0xbe   :  { %v110_v42 = vmul.f32 %v748_v34, %v102_v40  ;;  %804 = vmatprep.mubr.msk.f32.mxu0 %vm71_vm0, %v117_v41  ;;  %v440_v34 = vld [vmem:[%s1173_s7 + $0x18] sm:$0xff] }
  0xbf   :  { %v868_v35 = vpack.c.bf16 %v440_v34, %v439_v33 }
  0xc0   :  { %v118_v43 = vadd.f32 %v749_v36, %v110_v42  ;;  %v952_v36 = vmov 0.0  }
  0xc2   :  { %805 = vmatmul.mubr.msk.f32.vlgmr.msra.gmra.mrb[0].mxu0 %vm71_vm0, %v118_v43 }
  0xc3   :  { %819 = vmatpush3.msk.msra.mxu0 %vm342_vm1, %v335_v52 }
  0xc4   :  { %870 = vmatprep.subr.bf16.mxu0 %v950_v32 }
 0x195   :  { %v806_v48 = vpop.f32.mrb[0].mxu0 }
 0x196   :  { %v202_v49 = vpop.f32.mrb[1].mxu0  ;;  %v1087_v51 = vadd.f32 %v806_v48, %v750_v47 }
 0x197   :  { %v1085_v50 = vadd.f32 %v750_v47, %v202_v49 }
 0x199   :  { %815 = vmatprep.mubr.msk.f32.mxu1 %vm71_vm0, %v1085_v50 }
 0x19a   :  { %816 = vmatmul.mubr.msk.f32.vlgmr.msra.gmra.mrb[0].mxu1 %vm71_vm0, %v1087_v51 }
 0x19b   :  { %866 = vmatpush3.bf16.msra.mxu1 %v865_v31  ;;  %831 = vmatprep.mubr.msk.f32.mxu1 %vm951_vm3, %v952_v36 }
 0x19c   :  { %867 = vmatprep.subr.bf16.mxu1 %v950_v32 }
 0x19f   :  { %869 = vmatpush3.bf16.msra.mxu1 %v868_v35 }
 0x26d   :  { %v817_v53 = vpop.f32.mrb[0].mxu1 }
 0x26e   :  { %v304_v54 = vsel %vm296_vm2, %v817_v53, -inf  ;;  %v287_v55 = vpop.f32.mrb[1].mxu1 }
 0x26f   :  { %v305_v56 = vrot.slane %v304_v54, 4  ;;  %v297_v57 = vsel %vm296_vm2, %v287_v55, -inf }
 0x270   :  { %v298_v58 = vrot.slane %v297_v57, 4 }
 0x271   :  { %v306_v59 = vmax.f32 %v304_v54, %v305_v56 }
 0x272   :  { %v299_v60 = vmax.f32 %v297_v57, %v298_v58 }
 0x273   :  { %v307_v61 = vrot.slane %v306_v59, 2 }
 0x274   :  { %v300_v62 = vrot.slane %v299_v60, 2 }
 0x275   :  { %v308_v63 = vmax.f32 %v306_v59, %v307_v61 }
 0x276   :  { %v301_v0 = vmax.f32 %v299_v60, %v300_v62 }
 0x277   :  { %v309_v1 = vrot.slane %v308_v63, 1 }
 0x278   :  { %v302_v2 = vrot.slane %v301_v0, 1 }
 0x279   :  { %v310_v3 = vmax.f32 %v308_v63, %v309_v1  ;;  %v557_v63 = vld [vmem:[%s1177_s11] sm:$0xff] }
 0x27a   :  { %v303_v4 = vmax.f32 %v301_v0, %v302_v2  ;;  %v558_v0 = vld [vmem:[%s1177_s11 + $0x8] sm:$0xff] }
 0x27b   :  { %v312_v5 = vsub.f32 %v817_v53, %v310_v3  ;;  %v871_v1 = vpack.c.bf16 %v558_v0, %v557_v63 }
 0x27c   :  { %v311_v6 = vsub.f32 %v287_v55, %v303_v4 }
 0x27d   :  { %v315_v7 = vmul.f32 1.442695, %v312_v5 }
 0x27e   :  { %v313_v8 = vmul.f32 1.442695, %v311_v6 }
 0x27f   :  { %887 = vpow2.f32 %v315_v7 }
 0x280   :  { %889 = vpow2.f32 %v313_v8 }
 0x289   :  { %v888_v9 = vpop.eup %887 }
 0x28a   :  { %v890_v10 = vpop.eup %889  ;;  %v324_v11 = vsel %vm296_vm2, %v888_v9, 0.0 }
 0x28b   :  { %v325_v12 = vrot.slane %v324_v11, 4  ;;  %v317_v13 = vsel %vm296_vm2, %v890_v10, 0.0 }
 0x28c   :  { %v318_v14 = vrot.slane %v317_v13, 4 }
 0x28d   :  { %v326_v15 = vadd.f32 %v325_v12, %v324_v11  ;;  %v760_v11 = vld [vmem:[%s1175_s9] ss:$0 sm:$0xff] }
 0x28e   :  { %v319_v16 = vadd.f32 %v318_v14, %v317_v13  ;;  %v761_v13 = vld [vmem:[%s1176_s10] ss:$0 sm:$0xff] }
 0x28f   :  { %v327_v17 = vrot.slane %v326_v15, 2 }
 0x290   :  { %v320_v18 = vrot.slane %v319_v16, 2 }
 0x291   :  { %v328_v19 = vadd.f32 %v327_v17, %v326_v15  ;;  %v650_v17 = vld [vmem:[%s1179_s13 + $0x8] sm:$0xff] }
 0x292   :  { %v321_v20 = vadd.f32 %v320_v18, %v319_v16  ;;  %v649_v16 = vld [vmem:[%s1179_s13] sm:$0xff] }
 0x293   :  { %v329_v21 = vrot.slane %v328_v19, 1  ;;  %v874_v18 = vpack.c.bf16 %v650_v17, %v649_v16 }
 0x294   :  { %v322_v22 = vrot.slane %v321_v20, 1 }
 0x295   :  { %v330_v23 = vadd.f32 %v329_v21, %v328_v19  ;;  %v762_v19 = vld [vmem:[%s1178_s12] ss:$0 sm:$0xff]  ;;  %s953_s12 = smov [#allocation5]  }
 0x296   :  { %v323_v24 = vadd.f32 %v322_v22, %v321_v20  ;;  %s739_s5 = sshll.u32 %s953_s12, 4  ;;  %s740_s5 = int_to_ptr.vmem [resolvable:$true] %s739_s5 }
 0x297   :  { %891 = vrcp.f32 %v330_v23  ;;  %s921_s19 = scalar_lea.vmem %s740_s5, 32  ;;  %p926_p9 = scmp.lt.s32.totalorder %s740_s5, %s740_s5 }
 0x298   :  { %893 = vrcp.f32 %v323_v24  ;;  %p922_p8 = scmp.ne.s32.totalorder %s740_s5, %s921_s19  ;;  %p927_p10 = scmp.lt.s32.totalorder %s921_s19, %s921_s19 }
 0x29a   :  { %p928_p11 = por %p927_p10, %p926_p9 }
 0x29c   :  { %p929_p12 = pnand %p928_p11, %p922_p8 }
 0x2a1   :  { %v892_v25 = vpop.eup %891 }
 0x2a2   :  { %v894_v26 = vpop.eup %893  ;;  %v334_v28 = vmul.f32 %v892_v25, %v888_v9 }
 0x2a3   :  { %v333_v27 = vmul.f32 %v894_v26, %v890_v10 }
 0x2a5   :  { %820 = vmatprep.mubr.msk.f32.mxu0 %vm296_vm2, %v333_v27 }
 0x2a6   :  { %821 = vmatmul.mubr.msk.f32.vlgmr.msra.gmra.mrb[2].mxu0 %vm296_vm2, %v334_v28 }
 0x2a7   :  { %838 = vmatprep.mubr.msk.f32.mxu0 %vm951_vm3, %v952_v36  ;;  %872 = vmatpush3.bf16.msra.mxu0 %v871_v1 }
 0x2a8   :  { %873 = vmatprep.subr.bf16.mxu0 %v950_v32  ;;  %v764_v32 = vld [vmem:[%s1180_s14] ss:$0 sm:$0xff] }
 0x379   :  { %v822_v37 = vpop.f32.mrb[2].mxu0 }
 0x37a   :  { %v422_v38 = vmul.f32 %v822_v37, %v1087_v51  ;;  %v412_v39 = vpop.f32.mrb[3].mxu0 }
 0x37b   :  { %v421_v40 = vmul.f32 %v412_v39, %v1085_v50  ;;  %v758_v50 = vld [vmem:[%s1174_s8] ss:$0 sm:$0xff] }
 0x37c   :  { %v430_v41 = vsel %vm71_vm0, %v422_v38, 0.0 }
 0x37d   :  { %v431_v42 = vrot.slane %v430_v41, 4  ;;  %v423_v43 = vsel %vm71_vm0, %v421_v40, 0.0 }
 0x37e   :  { %v424_v44 = vrot.slane %v423_v43, 4 }
 0x37f   :  { %v432_v45 = vadd.f32 %v431_v42, %v430_v41 }
 0x380   :  { %v425_v46 = vadd.f32 %v424_v44, %v423_v43 }
 0x381   :  { %v433_v47 = vrot.slane %v432_v45, 2 }
 0x382   :  { %v426_v48 = vrot.slane %v425_v46, 2 }
 0x383   :  { %v434_v49 = vadd.f32 %v433_v47, %v432_v45 }
 0x384   :  { %v427_v52 = vadd.f32 %v426_v48, %v425_v46 }
 0x385   :  { %v435_v53 = vrot.slane %v434_v49, 1 }
 0x386   :  { %v428_v54 = vrot.slane %v427_v52, 1 }
 0x387   :  { %v436_v55 = vadd.f32 %v435_v53, %v434_v49 }
 0x388   :  { %v429_v51 = vadd.f32 %v428_v54, %v427_v52 }
 0x38a   :  { %v451_v56 = vsel %vm450_vm4, %v436_v55, %v429_v51 }
 0x38b   :  { %832 = vmatmul.mubr.msk.f32.vlgmr.msra.gmra.mrb[2].mxu1 %vm71_vm0, %v451_v56 }
 0x45e   :  { %v520_v57 = vpop.f32.mrb[2].mxu1 }
 0x45f   :  { %v521_v58 = vadd.f32 %v758_v50, %v520_v57  ;;  %v833_v59 = vpop.f32.mrb[3].mxu1 }
 0x461   :  { %v527_v60 = vsel %vm526_vm5, %v521_v58, 0.0  ;;  %v532_v61 = vmul.f32 %v521_v58, %v521_v58 }
 0x462   :  { %528 = vadd.xlane.f32.xlu0 %v527_v60 }
 0x463   :  { %v533_v62 = vsel %vm526_vm5, %v532_v61, 0.0 }
 0x464   :  { %534 = vadd.xlane.f32.xlu1 %v533_v62 }
 0x4ef   :  { %v529_v2 = vpop.xlane.xlu0 %528 }
 0x4f0   :  { %v531_v3 = vmul.f32 0.0625, %v529_v2 }
 0x4f1   :  { %v535_v4 = vpop.xlane.xlu1 %534 }
 0x4f2   :  { %v537_v5 = vmul.f32 %v531_v3, %v531_v3  ;;  %v536_v6 = vmul.f32 0.0625, %v535_v4  ;;  %v539_v9 = vsub.f32 %v521_v58, %v531_v3 }
 0x4f4   :  { %v538_v7 = vsub.f32 %v536_v6, %v537_v5 }
 0x4f6   :  { %v540_v8 = vadd.f32 1e-05, %v538_v7 }
 0x4f8   :  { %895 = vrsqrt.f32 %v540_v8 }
 0x502   :  { %v896_v10 = vpop.eup %895 }
 0x503   :  { %v542_v12 = vmul.f32 %v896_v10, %v539_v9 }
 0x505   :  { %v549_v14 = vmul.f32 %v760_v11, %v542_v12 }
 0x507   :  { %v556_v15 = vadd.f32 %v761_v13, %v549_v14 }
 0x509   :  { %839 = vmatmul.mubr.msk.f32.vlgmr.msra.gmra.mrb[4].mxu0 %vm566_vm6, %v556_v15 }
 0x50a   :  { %845 = vmatprep.mubr.msk.f32.mxu0 %vm951_vm3, %v952_v36  ;;  %875 = vmatpush3.bf16.msra.mxu0 %v874_v18 }
 0x5dc   :  { %v636_v20 = vpop.f32.mrb[4].mxu0 }
 0x5dd   :  { %v637_v21 = vadd.f32 %v762_v19, %v636_v20  ;;  %v840_v22 = vpop.f32.mrb[5].mxu0 }
 0x5df   :  { %v641_v23 = vmul.f32 %v637_v21, %v637_v21  ;;  %v640_v29 = vmul.f32 0.5, %v637_v21 }
 0x5e1   :  { %v642_v24 = vmul.f32 %v641_v23, %v637_v21 }
 0x5e3   :  { %v643_v25 = vmul.f32 0.044715, %v642_v24 }
 0x5e5   :  { %v644_v26 = vadd.f32 %v643_v25, %v637_v21 }
 0x5e7   :  { %v645_v27 = vmul.f32 0.7978846, %v644_v26 }
 0x5e9   :  { %897 = vtanh.f32 %v645_v27 }
 0x5f3   :  { %v898_v28 = vpop.eup %897 }
 0x5f4   :  { %v647_v30 = vadd.f32 1.0, %v898_v28 }
 0x5f6   :  { %v648_v31 = vmul.f32 %v647_v30, %v640_v29 }
 0x5f8   :  { %846 = vmatmul.mubr.msk.f32.vlgmr.msra.gmra.mrb[6].mxu0 %vm566_vm6, %v648_v31 }
 0x6cb   :  { %v727_v33 = vpop.f32.mrb[6].mxu0 }
 0x6cc   :  { %v728_v34 = vadd.f32 %v764_v32, %v727_v33  ;;  %v847_v35 = vpop.f32.mrb[7].mxu0 }
 0x6ce   :  { %v731_v36 = vadd.f32 %v728_v34, %v521_v58 }
 0x6d0   :  { %732 = vst.msk [vmem:[#allocation5] sm:$0x3] %vm526_vm5, %v731_v36 }
 0x6d1   :  { %932 = shalt.err (!%p929_p12)
}
 0x6d2   :  { %s933_s14 = scalar_lea.hbm %s1181_s15, 32 }
 0x6d3   :  { %p934_p13 = scmp.ne.s32.totalorder %s1181_s15, %s933_s14  ;;  %p937_p0 = scmp.lt.u32.totalorder %s933_s14, %s1181_s15 }
 0x6d5   :  { %p939_p1 = pnand %p937_p0, %p934_p13 }
 0x6d7   :  { %942 = shalt.err (!%p939_p1)
}
 0x6d8   :  { %742 = dma.vmem_to_hbm [thread:$0]  %s740_s5, 32, %s1181_s15, [#allocation4]  }
 0x6d9   :  { %945 = dma.done.wait [#allocation4], 32  }
 0x6da   :  { %946 = vsyncadd [#allocation4], 4294967264 }
 0x6db   :  { %746 = vsyncpa [#allocation3], 1 }
 0x6dc   :  { %747 = vsyncpa [#allocation4], 1 }

// kernel: tpu_custom_call.1
= control target key start
LH: loop header
LB: loop body
LE: loop exit
PB: predicated region body
PF: predicated region fallthrough
CT: control target
= control target key end

     0   :  { %20 = vsyncpa [#allocation3], 0  ;;  %s1166_s0 = inlined_call_operand.hbm [shape: bf16[16,32], index: 0, kind: input, shape index: {}]   ;;  %s1167_s1 = inlined_call_operand.vmem [shape: f32[1,32], index: 1, kind: input, shape index: {}]   ;;  %s1168_s2 = inlined_call_operand.vmem [shape: f32[1,32], index: 2, kind: input, shape index: {}]   ;;  %s1169_s3 = inlined_call_operand.vmem [shape: f32[32,32], index: 3, kind: input, shape index: {}]   ;;  %s1170_s4 = inlined_call_operand.vmem [shape: f32[1,32], index: 4, kind: input, shape index: {}]   ;;  %s1171_s5 = inlined_call_operand.vmem [shape: f32[32,2], index: 5, kind: input, shape index: {}]   ;;  %s1172_s6 = inlined_call_operand.vmem [shape: f32[2,32], index: 6, kind: input, shape index: {}]   ;;  %s1173_s7 = inlined_call_operand.vmem [shape: f32[32,16], index: 7, kind: input, shape index: {}]   ;;  %s1174_s8 = inlined_call_operand.vmem [shape: f32[1,16], index: 8, kind: input, shape index: {}]   ;;  %s1175_s9 = inlined_call_operand.vmem [shape: f32[1,16], index: 9, kind: input, shape index: {}]   ;;  %s1176_s10 = inlined_call_operand.vmem [shape: f32[1,16], index: 10, kind: input, shape index: {}]   ;;  %s1177_s11 = inlined_call_operand.vmem [shape: f32[16,16], index: 11, kind: input, shape index: {}]   ;;  %s1178_s12 = inlined_call_operand.vmem [shape: f32[1,16], index: 12, kind: input, shape index: {}]   ;;  %s1179_s13 = inlined_call_operand.vmem [shape: f32[16,16], index: 13, kind: input, shape index: {}]   ;;  %s1180_s14 = inlined_call_operand.vmem [shape: f32[1,16], index: 14, kind: input, shape index: {}]   ;;  %s1181_s15 = inlined_call_operand.hbm [shape: f32[2,16], index: 15, kind: output, shape index: {}]  }
   0x1   :  { %21 = vsyncpa [#allocation4], 0  ;;  %s947_s18 = smov [#allocation2]   ;;  %s899_s22 = scalar_lea.hbm %s1166_s0, 128 }
   0x2   :  { %s27_s19 = sshll.u32 %s947_s18, 4  ;;  %p900_p0 = scmp.ne.s32.totalorder %s1166_s0, %s899_s22  ;;  %s28_s19 = int_to_ptr.vmem [resolvable:$true] %s27_s19 }
   0x3   :  { %p903_p1 = scmp.lt.u32.totalorder %s899_s22, %s1166_s0 }
   0x5   :  { %p905_p2 = pnand %p903_p1, %p900_p0 }
   0x7   :  { %908 = shalt.err (!%p905_p2)
}
   0x8   :  { %s909_s27 = scalar_lea.vmem %s28_s19, 128  ;;  %p914_p4 = scmp.lt.s32.totalorder %s28_s19, %s28_s19 }
   0x9   :  { %p910_p3 = scmp.ne.s32.totalorder %s28_s19, %s909_s27  ;;  %p915_p5 = scmp.lt.s32.totalorder %s909_s27, %s909_s27 }
   0xb   :  { %p916_p6 = por %p915_p5, %p914_p4 }
   0xd   :  { %p917_p7 = pnand %p916_p6, %p910_p3 }
   0xf   :  { %920 = shalt.err (!%p917_p7)
}
  0x10   :  { %s948_s28 = smov 64   ;;  %s949_s29 = smov 4  }
  0x11   :  { %33 = dma.hbm_to_vmem [thread:$0]  %s1166_s0, 128, %s28_s19, [#allocation3], %s948_s28, %s948_s28, %s949_s29  }
  0x12   :  { %943 = dma.done.wait [#allocation3], 128  }
  0x13   :  { %944 = vsyncadd [#allocation3], 4294967168  ;;  %v767_v0 = vld [vmem:[#allocation2] sm:$0xff]   ;;  %vm71_vm0 = vcmask 261120   ;;  %v120_v10 = vld [vmem:[%s1169_s3 + $0x8] sm:$0xff]  ;;  %vm342_vm1 = vcmask 1041408  }
  0x14   :  { %v768_v1 = vunpack.c.l.bf16 %v767_v0  ;;  %v769_v2 = vunpack.c.h.bf16 %v767_v0  ;;  %v119_v9 = vld [vmem:[%s1169_s3] sm:$0xff]  ;;  %v121_v11 = vld [vmem:[%s1169_s3 + $0x10] sm:$0xff]  ;;  %v122_v13 = vld [vmem:[%s1169_s3 + $0x18] sm:$0xff]  ;;  %vm296_vm2 = vcmask 15360   ;;  %vm951_vm3 = vmmov 0  }
  0x15   :  { %v848_v12 = vpack.c.bf16 %v120_v10, %v119_v9  ;;  %v852_v14 = vpack.c.bf16 %v122_v13, %v121_v11  ;;  %v211_v15 = vld [vmem:[%s1171_s5] sm:$0xff]  ;;  %v212_v16 = vld [vmem:[%s1171_s5 + $0x8] sm:$0xff]  ;;  %v213_v44 = vld [vmem:[%s1171_s5 + $0x10] sm:$0xff]  ;;  %vm450_vm4 = vcmask 1041409   ;;  %vm526_vm5 = vcmask 123904  }
  0x16   :  { %v72_v3 = vsel %vm71_vm0, %v768_v1, 0.0  ;;  %v81_v4 = vmul.f32 %v768_v1, %v768_v1  ;;  %v82_v5 = vmul.f32 %v769_v2, %v769_v2  ;;  %v75_v7 = vsel %vm71_vm0, %v769_v2, 0.0  ;;  %v748_v34 = vld [vmem:[%s1167_s1] ss:$0 sm:$0xff]  ;;  %v214_v45 = vld [vmem:[%s1171_s5 + $0x18] sm:$0xff] }
  0x17   :  { %73 = vadd.xlane.f32.xlu0 %v72_v3  ;;  %849 = vmatprep.subr.bf16.mxu0 %v848_v12  ;;  %v856_v17 = vpack.c.bf16 %v212_v16, %v211_v15  ;;  %v749_v36 = vld [vmem:[%s1168_s2] ss:$0 sm:$0xff]  ;;  %v860_v46 = vpack.c.bf16 %v214_v45, %v213_v44  ;;  %vm566_vm6 = vcmask 130048  }
  0x18   :  { %v83_v6 = vsel %vm71_vm0, %v81_v4, 0.0  ;;  %v86_v8 = vsel %vm71_vm0, %v82_v5, 0.0  ;;  %851 = vmatpush3.bf16.msra.mxu0 %v848_v12  ;;  %v750_v47 = vld [vmem:[%s1170_s4] ss:$0 sm:$0xff] }
  0x19   :  { %84 = vadd.xlane.f32.xlu1 %v83_v6  ;;  %853 = vmatprep.subr.bf16.mxu0 %v852_v14  ;;  %v335_v52 = vld [vmem:[%s1172_s6] sm:$0x3] }
  0x1a   :  { %857 = vmatprep.subr.bf16.mxu1 %v856_v17 }
  0x1b   :  { %76 = vadd.xlane.f32.xlu0 %v75_v7  ;;  %859 = vmatpush3.bf16.msra.mxu1 %v856_v17 }
  0x1c   :  { %855 = vmatpush3.bf16.msra.mxu0 %v852_v14  ;;  %861 = vmatprep.subr.bf16.mxu1 %v860_v46 }
  0x1d   :  { %87 = vadd.xlane.f32.xlu1 %v86_v8  ;;  %818 = vmatprep.subr.msk.mxu0 %vm342_vm1, %v335_v52 }
  0x1f   :  { %863 = vmatpush3.bf16.msra.mxu1 %v860_v46 }
  0xa4   :  { %v74_v18 = vpop.xlane.xlu0 %73 }
  0xa5   :  { %v79_v19 = vmul.f32 0.03125, %v74_v18 }
  0xa6   :  { %v85_v20 = vpop.xlane.xlu1 %84 }
  0xa7   :  { %v91_v21 = vmul.f32 %v79_v19, %v79_v19  ;;  %v89_v22 = vmul.f32 0.03125, %v85_v20  ;;  %v95_v32 = vsub.f32 %v768_v1, %v79_v19 }
  0xa8   :  { %v77_v23 = vpop.xlane.xlu0 %76 }
  0xa9   :  { %v93_v24 = vsub.f32 %v89_v22, %v91_v21  ;;  %v80_v25 = vmul.f32 0.03125, %v77_v23 }
  0xaa   :  { %v88_v26 = vpop.xlane.xlu1 %87 }
  0xab   :  { %v97_v27 = vadd.f32 1e-05, %v93_v24  ;;  %v92_v28 = vmul.f32 %v80_v25, %v80_v25  ;;  %v90_v29 = vmul.f32 0.03125, %v88_v26  ;;  %v96_v37 = vsub.f32 %v769_v2, %v80_v25 }
  0xad   :  { %883 = vrsqrt.f32 %v97_v27  ;;  %v94_v30 = vsub.f32 %v90_v29, %v92_v28  ;;  %v437_v29 = vld [vmem:[%s1173_s7] sm:$0xff] }
  0xaf   :  { %v98_v31 = vadd.f32 1e-05, %v94_v30  ;;  %v438_v30 = vld [vmem:[%s1173_s7 + $0x8] sm:$0xff] }
  0xb1   :  { %885 = vrsqrt.f32 %v98_v31  ;;  %v865_v31 = vpack.c.bf16 %v438_v30, %v437_v29 }
  0xb7   :  { %v884_v33 = vpop.eup %883 }
  0xb8   :  { %v101_v35 = vmul.f32 %v884_v33, %v95_v32  ;;  %v950_v32 = vmov 0.0|0.0   ;;  %v439_v33 = vld [vmem:[%s1173_s7 + $0x10] sm:$0xff] }
  0xb9   :  { %864 = vmatprep.subr.bf16.mxu1 %v950_v32 }
  0xba   :  { %v109_v38 = vmul.f32 %v748_v34, %v101_v35 }
  0xbb   :  { %v886_v39 = vpop.eup %885 }
  0xbc   :  { %v102_v40 = vmul.f32 %v886_v39, %v96_v37  ;;  %v117_v41 = vadd.f32 %v749_v36, %v109_v38 }
  0xbe   :  { %v110_v42 = vmul.f32 %v748_v34, %v102_v40  ;;  %804 = vmatprep.mubr.msk.f32.mxu0 %vm71_vm0, %v117_v41  ;;  %v440_v34 = vld [vmem:[%s1173_s7 + $0x18] sm:$0xff] }
  0xbf   :  { %v868_v35 = vpack.c.bf16 %v440_v34, %v439_v33 }
  0xc0   :  { %v118_v43 = vadd.f32 %v749_v36, %v110_v42  ;;  %v952_v36 = vmov 0.0  }
  0xc2   :  { %805 = vmatmul.mubr.msk.f32.vlgmr.msra.gmra.mrb[0].mxu0 %vm71_vm0, %v118_v43 }
  0xc3   :  { %819 = vmatpush3.msk.msra.mxu0 %vm342_vm1, %v335_v52 }
  0xc4   :  { %870 = vmatprep.subr.bf16.mxu0 %v950_v32 }
 0x195   :  { %v806_v48 = vpop.f32.mrb[0].mxu0 }
 0x196   :  { %v202_v49 = vpop.f32.mrb[1].mxu0  ;;  %v1087_v51 = vadd.f32 %v806_v48, %v750_v47 }
 0x197   :  { %v1085_v50 = vadd.f32 %v750_v47, %v202_v49 }
 0x199   :  { %815 = vmatprep.mubr.msk.f32.mxu1 %vm71_vm0, %v1085_v50 }
 0x19a   :  { %816 = vmatmul.mubr.msk.f32.vlgmr.msra.gmra.mrb[0].mxu1 %vm71_vm0, %v1087_v51 }
 0x19b   :  { %866 = vmatpush3.bf16.msra.mxu1 %v865_v31  ;;  %831 = vmatprep.mubr.msk.f32.mxu1 %vm951_vm3, %v952_v36 }
 0x19c   :  { %867 = vmatprep.subr.bf16.mxu1 %v950_v32 }
 0x19f   :  { %869 = vmatpush3.bf16.msra.mxu1 %v868_v35 }
 0x26d   :  { %v817_v53 = vpop.f32.mrb[0].mxu1 }
 0x26e   :  { %v304_v54 = vsel %vm296_vm2, %v817_v53, -inf  ;;  %v287_v55 = vpop.f32.mrb[1].mxu1 }
 0x26f   :  { %v305_v56 = vrot.slane %v304_v54, 4  ;;  %v297_v57 = vsel %vm296_vm2, %v287_v55, -inf }
 0x270   :  { %v298_v58 = vrot.slane %v297_v57, 4 }
 0x271   :  { %v306_v59 = vmax.f32 %v304_v54, %v305_v56 }
 0x272   :  { %v299_v60 = vmax.f32 %v297_v57, %v298_v58 }
 0x273   :  { %v307_v61 = vrot.slane %v306_v59, 2 }
 0x274   :  { %v300_v62 = vrot.slane %v299_v60, 2 }
 0x275   :  { %v308_v63 = vmax.f32 %v306_v59, %v307_v61 }
 0x276   :  { %v301_v0 = vmax.f32 %v299_v60, %v300_v62 }
 0x277   :  { %v309_v1 = vrot.slane %v308_v63, 1 }
 0x278   :  { %v302_v2 = vrot.slane %v301_v0, 1 }
 0x279   :  { %v310_v3 = vmax.f32 %v308_v63, %v309_v1  ;;  %v557_v63 = vld [vmem:[%s1177_s11] sm:$0xff] }
 0x27a   :  { %v303_v4 = vmax.f32 %v301_v0, %v302_v2  ;;  %v558_v0 = vld [vmem:[%s1177_s11 + $0x8] sm:$0xff] }
 0x27b   :  { %v312_v5 = vsub.f32 %v817_v53, %v310_v3  ;;  %v871_v1 = vpack.c.bf16 %v558_v0, %v557_v63 }
 0x27c   :  { %v311_v6 = vsub.f32 %v287_v55, %v303_v4 }
 0x27d   :  { %v315_v7 = vmul.f32 1.442695, %v312_v5 }
 0x27e   :  { %v313_v8 = vmul.f32 1.442695, %v311_v6 }
 0x27f   :  { %887 = vpow2.f32 %v315_v7 }
 0x280   :  { %889 = vpow2.f32 %v313_v8 }
 0x289   :  { %v888_v9 = vpop.eup %887 }
 0x28a   :  { %v890_v10 = vpop.eup %889  ;;  %v324_v11 = vsel %vm296_vm2, %v888_v9, 0.0 }
 0x28b   :  { %v325_v12 = vrot.slane %v324_v11, 4  ;;  %v317_v13 = vsel %vm296_vm2, %v890_v10, 0.0 }
 0x28c   :  { %v318_v14 = vrot.slane %v317_v13, 4 }
 0x28d   :  { %v326_v15 = vadd.f32 %v325_v12, %v324_v11  ;;  %v760_v11 = vld [vmem:[%s1175_s9] ss:$0 sm:$0xff] }
 0x28e   :  { %v319_v16 = vadd.f32 %v318_v14, %v317_v13  ;;  %v761_v13 = vld [vmem:[%s1176_s10] ss:$0 sm:$0xff] }
 0x28f   :  { %v327_v17 = vrot.slane %v326_v15, 2 }
 0x290   :  { %v320_v18 = vrot.slane %v319_v16, 2 }
 0x291   :  { %v328_v19 = vadd.f32 %v327_v17, %v326_v15  ;;  %v650_v17 = vld [vmem:[%s1179_s13 + $0x8] sm:$0xff] }
 0x292   :  { %v321_v20 = vadd.f32 %v320_v18, %v319_v16  ;;  %v649_v16 = vld [vmem:[%s1179_s13] sm:$0xff] }
 0x293   :  { %v329_v21 = vrot.slane %v328_v19, 1  ;;  %v874_v18 = vpack.c.bf16 %v650_v17, %v649_v16 }
 0x294   :  { %v322_v22 = vrot.slane %v321_v20, 1 }
 0x295   :  { %v330_v23 = vadd.f32 %v329_v21, %v328_v19  ;;  %v762_v19 = vld [vmem:[%s1178_s12] ss:$0 sm:$0xff]  ;;  %s953_s12 = smov [#allocation5]  }
 0x296   :  { %v323_v24 = vadd.f32 %v322_v22, %v321_v20  ;;  %s739_s5 = sshll.u32 %s953_s12, 4  ;;  %s740_s5 = int_to_ptr.vmem [resolvable:$true] %s739_s5 }
 0x297   :  { %891 = vrcp.f32 %v330_v23  ;;  %s921_s19 = scalar_lea.vmem %s740_s5, 32  ;;  %p926_p9 = scmp.lt.s32.totalorder %s740_s5, %s740_s5 }
 0x298   :  { %893 = vrcp.f32 %v323_v24  ;;  %p922_p8 = scmp.ne.s32.totalorder %s740_s5, %s921_s19  ;;  %p927_p10 = scmp.lt.s32.totalorder %s921_s19, %s921_s19 }
 0x29a   :  { %p928_p11 = por %p927_p10, %p926_p9 }
 0x29c   :  { %p929_p12 = pnand %p928_p11, %p922_p8 }
 0x2a1   :  { %v892_v25 = vpop.eup %891 }
 0x2a2   :  { %v894_v26 = vpop.eup %893  ;;  %v334_v28 = vmul.f32 %v892_v25, %v888_v9 }
 0x2a3   :  { %v333_v27 = vmul.f32 %v894_v26, %v890_v10 }
 0x2a5   :  { %820 = vmatprep.mubr.msk.f32.mxu0 %vm296_vm2, %v333_v27 }
 0x2a6   :  { %821 = vmatmul.mubr.msk.f32.vlgmr.msra.gmra.mrb[2].mxu0 %vm296_vm2, %v334_v28 }
 0x2a7   :  { %838 = vmatprep.mubr.msk.f32.mxu0 %vm951_vm3, %v952_v36  ;;  %872 = vmatpush3.bf16.msra.mxu0 %v871_v1 }
 0x2a8   :  { %873 = vmatprep.subr.bf16.mxu0 %v950_v32  ;;  %v764_v32 = vld [vmem:[%s1180_s14] ss:$0 sm:$0xff] }
 0x379   :  { %v822_v37 = vpop.f32.mrb[2].mxu0 }
 0x37a   :  { %v422_v38 = vmul.f32 %v822_v37, %v1087_v51  ;;  %v412_v39 = vpop.f32.mrb[3].mxu0 }
 0x37b   :  { %v421_v40 = vmul.f32 %v412_v39, %v1085_v50  ;;  %v758_v50 = vld [vmem:[%s1174_s8] ss:$0 sm:$0xff] }
 0x37c   :  { %v430_v41 = vsel %vm71_vm0, %v422_v38, 0.0 }
 0x37d   :  { %v431_v42 = vrot.slane %v430_v41, 4  ;;  %v423_v43 = vsel %vm71_vm0, %v421_v40, 0.0 }
 0x37e   :  { %v424_v44 = vrot.slane %v423_v43, 4 }
 0x37f   :  { %v432_v45 = vadd.f32 %v431_v42, %v430_v41 }
 0x380   :  { %v425_v46 = vadd.f32 %v424_v44, %v423_v43 }
 0x381   :  { %v433_v47 = vrot.slane %v432_v45, 2 }
 0x382   :  { %v426_v48 = vrot.slane %v425_v46, 2 }
 0x383   :  { %v434_v49 = vadd.f32 %v433_v47, %v432_v45 }
 0x384   :  { %v427_v52 = vadd.f32 %v426_v48, %v425_v46 }
 0x385   :  { %v435_v53 = vrot.slane %v434_v49, 1 }
 0x386   :  { %v428_v54 = vrot.slane %v427_v52, 1 }
 0x387   :  { %v436_v55 = vadd.f32 %v435_v53, %v434_v49 }
 0x388   :  { %v429_v51 = vadd.f32 %v428_v54, %v427_v52 }
 0x38a   :  { %v451_v56 = vsel %vm450_vm4, %v436_v55, %v429_v51 }
 0x38b   :  { %832 = vmatmul.mubr.msk.f32.vlgmr.msra.gmra.mrb[2].mxu1 %vm71_vm0, %v451_v56 }
 0x45e   :  { %v520_v57 = vpop.f32.mrb[2].mxu1 }
 0x45f   :  { %v521_v58 = vadd.f32 %v758_v50, %v520_v57  ;;  %v833_v59 = vpop.f32.mrb[3].mxu1 }
 0x461   :  { %v527_v60 = vsel %vm526_vm5, %v521_v58, 0.0  ;;  %v532_v61 = vmul.f32 %v521_v58, %v521_v58 }
 0x462   :  { %528 = vadd.xlane.f32.xlu0 %v527_v60 }
 0x463   :  { %v533_v62 = vsel %vm526_vm5, %v532_v61, 0.0 }
 0x464   :  { %534 = vadd.xlane.f32.xlu1 %v533_v62 }
 0x4ef   :  { %v529_v2 = vpop.xlane.xlu0 %528 }
 0x4f0   :  { %v531_v3 = vmul.f32 0.0625, %v529_v2 }
 0x4f1   :  { %v535_v4 = vpop.xlane.xlu1 %534 }
 0x4f2   :  { %v537_v5 = vmul.f32 %v531_v3, %v531_v3  ;;  %v536_v6 = vmul.f32 0.0625, %v535_v4  ;;  %v539_v9 = vsub.f32 %v521_v58, %v531_v3 }
 0x4f4   :  { %v538_v7 = vsub.f32 %v536_v6, %v537_v5 }
 0x4f6   :  { %v540_v8 = vadd.f32 1e-05, %v538_v7 }
 0x4f8   :  { %895 = vrsqrt.f32 %v540_v8 }
 0x502   :  { %v896_v10 = vpop.eup %895 }
 0x503   :  { %v542_v12 = vmul.f32 %v896_v10, %v539_v9 }
 0x505   :  { %v549_v14 = vmul.f32 %v760_v11, %v542_v12 }
 0x507   :  { %v556_v15 = vadd.f32 %v761_v13, %v549_v14 }
 0x509   :  { %839 = vmatmul.mubr.msk.f32.vlgmr.msra.gmra.mrb[4].mxu0 %vm566_vm6, %v556_v15 }
 0x50a   :  { %845 = vmatprep.mubr.msk.f32.mxu0 %vm951_vm3, %v952_v36  ;;  %875 = vmatpush3.bf16.msra.mxu0 %v874_v18 }
 0x5dc   :  { %v636_v20 = vpop.f32.mrb[4].mxu0 }
 0x5dd   :  { %v637_v21 = vadd.f32 %v762_v19, %v636_v20  ;;  %v840_v22 = vpop.f32.mrb[5].mxu0 }
 0x5df   :  { %v641_v23 = vmul.f32 %v637_v21, %v637_v21  ;;  %v640_v29 = vmul.f32 0.5, %v637_v21 }
 0x5e1   :  { %v642_v24 = vmul.f32 %v641_v23, %v637_v21 }
 0x5e3   :  { %v643_v25 = vmul.f32 0.044715, %v642_v24 }
 0x5e5   :  { %v644_v26 = vadd.f32 %v643_v25, %v637_v21 }
 0x5e7   :  { %v645_v27 = vmul.f32 0.7978846, %v644_v26 }
 0x5e9   :  { %897 = vtanh.f32 %v645_v27 }
 0x5f3   :  { %v898_v28 = vpop.eup %897 }
 0x5f4   :  { %v647_v30 = vadd.f32 1.0, %v898_v28 }
 0x5f6   :  { %v648_v31 = vmul.f32 %v647_v30, %v640_v29 }
 0x5f8   :  { %846 = vmatmul.mubr.msk.f32.vlgmr.msra.gmra.mrb[6].mxu0 %vm566_vm6, %v648_v31 }
 0x6cb   :  { %v727_v33 = vpop.f32.mrb[6].mxu0 }
 0x6cc   :  { %v728_v34 = vadd.f32 %v764_v32, %v727_v33  ;;  %v847_v35 = vpop.f32.mrb[7].mxu0 }
 0x6ce   :  { %v731_v36 = vadd.f32 %v728_v34, %v521_v58 }
 0x6d0   :  { %732 = vst.msk [vmem:[#allocation5] sm:$0x3] %vm526_vm5, %v731_v36 }
 0x6d1   :  { %932 = shalt.err (!%p929_p12)
}
 0x6d2   :  { %s933_s14 = scalar_lea.hbm %s1181_s15, 32 }
 0x6d3   :  { %p934_p13 = scmp.ne.s32.totalorder %s1181_s15, %s933_s14  ;;  %p937_p0 = scmp.lt.u32.totalorder %s933_s14, %s1181_s15 }
 0x6d5   :  { %p939_p1 = pnand %p937_p0, %p934_p13 }
 0x6d7   :  { %942 = shalt.err (!%p939_p1)
}
 0x6d8   :  { %742 = dma.vmem_to_hbm [thread:$0]  %s740_s5, 32, %s1181_s15, [#allocation4]  }
 0x6d9   :  { %945 = dma.done.wait [#allocation4], 32  }
 0x6da   :  { %946 = vsyncadd [#allocation4], 4294967264 }
 0x6db   :  { %746 = vsyncpa [#allocation3], 1 }
 0x6dc   :  { %747 = vsyncpa [#allocation4], 1 }

</bundles_post_ra>
